<compile_context>
chip_gen: v7x
topology: tpu7x:2x2x1
jax: 0.10.0
libtpu: 0.0.40
codegen_flags: <defaults>
</compile_context>

<pallas_src>
import math
import functools

import jax
import jax.numpy as jnp
from jax.experimental import pallas as pl
from jax.experimental.pallas import tpu as pltpu

EPS = 1e-6

# MXU input precision: bf16 inputs + f32 accumulation (valid on v5e/v6e/v7x MXUs).
MXU_DTYPE = jnp.bfloat16

# Row tile for the (B*T, *) matmul / layernorm kernels.
TM_DEFAULT = 512


def _vmem_limit_bytes():
    # ~25% headroom below physical VMEM (compiler scratch + double-buffered tiles).
    try:
        info = pltpu.get_tpu_info()
        cap = getattr(info, "vmem_capacity_bytes", None)
        if cap:
            return int(cap) * 3 // 4
    except Exception:
        pass
    return 48 * 1024 * 1024  # safe on every generation (v7x physical VMEM is 64 MiB)


VMEM_LIMIT_BYTES = _vmem_limit_bytes()


def _mosaic_params(grid_rank):
    return pltpu.CompilerParams(
        dimension_semantics=("parallel",) * grid_rank,
        vmem_limit_bytes=VMEM_LIMIT_BYTES,
    )


def _row_tile(M, tm=TM_DEFAULT):
    tm = min(tm, M)
    # Keep at least 2 grid steps when cheap to do so (v7x has 2 TensorCores to shard across).
    if tm == M and M >= 16 and M % 16 == 0:
        tm = M // 2
    return tm


def _heads_per_step(h, dk):
    # Process G heads per attention grid step so the batched contraction has >= ~128 lanes.
    target = max(1, 128 // max(dk, 1))
    g = min(h, target)
    while h % g != 0:
        g -= 1
    return max(g, 1)


# --------------------------------------------------------------------------------------
# Pallas kernels
# --------------------------------------------------------------------------------------

def _layernorm_stats(x, n_feat):
    mean = jnp.mean(x, axis=-1, keepdims=True)
    # unbiased (n-1) variance and eps added to std: matches the Annotated Transformer LayerNorm
    # (torch.Tensor.std()), which intentionally differs from nn.LayerNorm.
    var = jnp.sum((x - mean) ** 2, axis=-1, keepdims=True) / (n_feat - 1)
    inv = pl.reciprocal(jnp.sqrt(var) + EPS, approx=False)  # exact: tighter parity across 2N layers
    return mean, inv


def _layernorm_kernel(x_ref, g_ref, b_ref, o_ref, *, n_feat):
    x = x_ref[...]
    mean, inv = _layernorm_stats(x, n_feat)
    o_ref[...] = (g_ref[...] * (x - mean) * inv + b_ref[...]).astype(o_ref.dtype)


def _ln_linear_kernel(x_ref, g_ref, bln_ref, w_ref, b_ref, o_ref, *, relu, n_feat):
    # Fused pre-norm LayerNorm + Linear (+ optional ReLU). Weights are already bf16 in HBM.
    x = x_ref[...]
    mean, inv = _layernorm_stats(x, n_feat)
    nx = (g_ref[...] * (x - mean) * inv + bln_ref[...]).astype(w_ref.dtype)
    y = jnp.dot(nx, w_ref[...], preferred_element_type=jnp.float32) + b_ref[...]
    if relu:
        y = jnp.maximum(y, 0.0)
    o_ref[...] = y.astype(o_ref.dtype)


def _linear_kernel(x_ref, w_ref, b_ref, o_ref, *, relu):
    x = x_ref[...].astype(w_ref.dtype)  # no-op if the activation is already bf16
    y = jnp.dot(x, w_ref[...], preferred_element_type=jnp.float32) + b_ref[...]
    if relu:
        y = jnp.maximum(y, 0.0)
    o_ref[...] = y.astype(o_ref.dtype)


def _linear_residual_kernel(x_ref, w_ref, b_ref, res_ref, o_ref):
    # Fused Linear + residual add (the "x + sublayer(...)" of a SublayerConnection).
    x = x_ref[...].astype(w_ref.dtype)
    y = jnp.dot(x, w_ref[...], preferred_element_type=jnp.float32) + b_ref[...]
    o_ref[...] = (y + res_ref[...]).astype(o_ref.dtype)


def _attention_kernel(q_ref, k_ref, v_ref, m_ref, o_ref, *, scale):
    # One (batch, head-group) slice per grid step; G heads batched in a single einsum.
    q = q_ref[0]                         # (G, Tq, dk) bf16
    k = k_ref[0]                         # (G, Tk, dk) bf16
    v = v_ref[0]                         # (G, Tk, dk) bf16
    m = m_ref[0]                         # (Tm, Tk) int32, Tm in {1, Tq}; broadcast in-kernel
    s = jnp.einsum("gqd,gkd->gqk", q, k, preferred_element_type=jnp.float32) * scale
    s = jnp.where(m[None, :, :] == 0, -1e9, s)
    mx = jnp.max(s, axis=-1, keepdims=True)
    e = jnp.exp(s - mx)
    p = e * pl.reciprocal(jnp.sum(e, axis=-1, keepdims=True), approx=True)
    o = jnp.einsum("gqk,gkd->gqd", p.astype(v.dtype), v, preferred_element_type=jnp.float32)
    o_ref[0] = o.astype(o_ref.dtype)


# --------------------------------------------------------------------------------------
# Pallas call wrappers (tiled grids)
# --------------------------------------------------------------------------------------

def pallas_layernorm(x2d, gamma, beta, tm=TM_DEFAULT):
    M, D = x2d.shape
    tm = _row_tile(M, tm)
    grid = (pl.cdiv(M, tm),)
    return pl.pallas_call(
        functools.partial(_layernorm_kernel, n_feat=D),
        out_shape=jax.ShapeDtypeStruct((M, D), jnp.float32),
        grid=grid,
        in_specs=[
            pl.BlockSpec((tm, D), lambda i: (i, 0)),
            pl.BlockSpec((1, D), lambda i: (0, 0)),
            pl.BlockSpec((1, D), lambda i: (0, 0)),
        ],
        out_specs=pl.BlockSpec((tm, D), lambda i: (i, 0)),
        compiler_params=_mosaic_params(1),
    )(x2d, gamma.reshape(1, D), beta.reshape(1, D))


def pallas_ln_linear(x2d, gamma, beta, w, b, relu=False, out_dtype=MXU_DTYPE, tm=TM_DEFAULT):
    M, K = x2d.shape
    N = w.shape[1]
    tm = _row_tile(M, tm)
    grid = (pl.cdiv(M, tm),)
    return pl.pallas_call(
        functools.partial(_ln_linear_kernel, relu=relu, n_feat=K),
        out_shape=jax.ShapeDtypeStruct((M, N), out_dtype),
        grid=grid,
        in_specs=[
            pl.BlockSpec((tm, K), lambda i: (i, 0)),
            pl.BlockSpec((1, K), lambda i: (0, 0)),
            pl.BlockSpec((1, K), lambda i: (0, 0)),
            pl.BlockSpec((K, N), lambda i: (0, 0)),   # bf16 weight resident across row tiles
            pl.BlockSpec((1, N), lambda i: (0, 0)),
        ],
        out_specs=pl.BlockSpec((tm, N), lambda i: (i, 0)),
        compiler_params=_mosaic_params(1),
    )(x2d, gamma.reshape(1, K), beta.reshape(1, K), w, b.reshape(1, N))


def pallas_linear(x2d, w, b, relu=False, out_dtype=MXU_DTYPE, tm=TM_DEFAULT):
    M, K = x2d.shape
    N = w.shape[1]
    tm = _row_tile(M, tm)
    grid = (pl.cdiv(M, tm),)
    return pl.pallas_call(
        functools.partial(_linear_kernel, relu=relu),
        out_shape=jax.ShapeDtypeStruct((M, N), out_dtype),
        grid=grid,
        in_specs=[
            pl.BlockSpec((tm, K), lambda i: (i, 0)),
            pl.BlockSpec((K, N), lambda i: (0, 0)),
            pl.BlockSpec((1, N), lambda i: (0, 0)),
        ],
        out_specs=pl.BlockSpec((tm, N), lambda i: (i, 0)),
        compiler_params=_mosaic_params(1),
    )(x2d, w, b.reshape(1, N))


def pallas_linear_residual(x2d, w, b, res2d, tm=TM_DEFAULT):
    M, K = x2d.shape
    N = w.shape[1]
    tm = _row_tile(M, tm)
    grid = (pl.cdiv(M, tm),)
    return pl.pallas_call(
        _linear_residual_kernel,
        out_shape=jax.ShapeDtypeStruct((M, N), jnp.float32),   # residual stream stays f32
        grid=grid,
        in_specs=[
            pl.BlockSpec((tm, K), lambda i: (i, 0)),
            pl.BlockSpec((K, N), lambda i: (0, 0)),
            pl.BlockSpec((1, N), lambda i: (0, 0)),
            pl.BlockSpec((tm, N), lambda i: (i, 0)),
        ],
        out_specs=pl.BlockSpec((tm, N), lambda i: (i, 0)),
        compiler_params=_mosaic_params(1),
    )(x2d, w, b.reshape(1, N), res2d)


def pallas_attention(q, k, v, mask):
    # q: (B, h, Tq, dk) bf16; k, v: (B, h, Tk, dk) bf16; mask: (B, 1 or Tq, Tk) int (0/1).
    B, h, Tq, dk = q.shape
    Tk = k.shape[2]
    Tm = mask.shape[1]
    mask = mask.astype(jnp.int32)
    G = _heads_per_step(h, dk)
    grid = (B, h // G)
    return pl.pallas_call(
        functools.partial(_attention_kernel, scale=1.0 / math.sqrt(dk)),
        out_shape=jax.ShapeDtypeStruct((B, h, Tq, dk), MXU_DTYPE),
        grid=grid,
        in_specs=[
            pl.BlockSpec((1, G, Tq, dk), lambda b, g: (b, g, 0, 0)),
            pl.BlockSpec((1, G, Tk, dk), lambda b, g: (b, g, 0, 0)),
            pl.BlockSpec((1, G, Tk, dk), lambda b, g: (b, g, 0, 0)),
            # mask is indexed by batch only: never broadcast over heads (or Tq) in HBM.
            pl.BlockSpec((1, Tm, Tk), lambda b, g: (b, 0, 0)),
        ],
        out_specs=pl.BlockSpec((1, G, Tq, dk), lambda b, g: (b, g, 0, 0)),
        compiler_params=_mosaic_params(2),
    )(q, k, v, mask)


# --------------------------------------------------------------------------------------
# Deterministic parameter initialization (fused-weight layout, bf16 matmul weights in HBM)
# --------------------------------------------------------------------------------------

def init_linear(key, d_in, d_out):
    k1, k2 = jax.random.split(key)
    lim = 1.0 / math.sqrt(d_in)
    return {"w": jax.random.uniform(k1, (d_in, d_out), jnp.float32, -lim, lim),
            "b": jax.random.uniform(k2, (d_out,), jnp.float32, -lim, lim)}


def init_layernorm(d):
    return {"g": jnp.ones((d,), jnp.float32), "b": jnp.zeros((d,), jnp.float32)}


def init_self_attn(key, d_model):
    ks = jax.random.split(key, 4)
    wq, wk, wv, wo = (init_linear(k, d_model, d_model) for k in ks)
    return {"qkv_w": jnp.concatenate([wq["w"], wk["w"], wv["w"]], axis=1).astype(MXU_DTYPE),
            "qkv_b": jnp.concatenate([wq["b"], wk["b"], wv["b"]], axis=0),
            "wo_w": wo["w"].astype(MXU_DTYPE), "wo_b": wo["b"]}


def init_cross_attn(key, d_model):
    ks = jax.random.split(key, 4)
    wq, wk, wv, wo = (init_linear(k, d_model, d_model) for k in ks)
    return {"q_w": wq["w"].astype(MXU_DTYPE), "q_b": wq["b"],
            "kv_w": jnp.concatenate([wk["w"], wv["w"]], axis=1).astype(MXU_DTYPE),
            "kv_b": jnp.concatenate([wk["b"], wv["b"]], axis=0),
            "wo_w": wo["w"].astype(MXU_DTYPE), "wo_b": wo["b"]}


def init_ff(key, d_model, d_ff):
    k1, k2 = jax.random.split(key)
    w1 = init_linear(k1, d_model, d_ff)
    w2 = init_linear(k2, d_ff, d_model)
    return {"w1_w": w1["w"].astype(MXU_DTYPE), "w1_b": w1["b"],
            "w2_w": w2["w"].astype(MXU_DTYPE), "w2_b": w2["b"]}


def init_encoder_layer(key, d_model, d_ff):
    k1, k2 = jax.random.split(key)
    return {"self_attn": init_self_attn(k1, d_model),
            "ff": init_ff(k2, d_model, d_ff),
            "ln1": init_layernorm(d_model),
            "ln2": init_layernorm(d_model)}


def init_decoder_layer(key, d_model, d_ff):
    k1, k2, k3 = jax.random.split(key, 3)
    return {"self_attn": init_self_attn(k1, d_model),
            "src_attn": init_cross_attn(k2, d_model),
            "ff": init_ff(k3, d_model, d_ff),
            "ln1": init_layernorm(d_model),
            "ln2": init_layernorm(d_model),
            "ln3": init_layernorm(d_model)}


def init_model(key, src_vocab, tgt_vocab, d_model, d_ff, n_layers):
    keys = jax.random.split(key, 2 * n_layers + 3)
    return {
        "src_emb": jax.random.normal(keys[0], (src_vocab, d_model), jnp.float32),
        "tgt_emb": jax.random.normal(keys[1], (tgt_vocab, d_model), jnp.float32),
        "enc_layers": [init_encoder_layer(keys[2 + i], d_model, d_ff) for i in range(n_layers)],
        "dec_layers": [init_decoder_layer(keys[2 + n_layers + i], d_model, d_ff) for i in range(n_layers)],
        "enc_norm": init_layernorm(d_model),
        "dec_norm": init_layernorm(d_model),
        "gen": init_linear(keys[-1], d_model, tgt_vocab),  # generator: constructed, not used in forward()
    }


def positional_encoding(max_len, d_model):
    pos = jnp.arange(max_len, dtype=jnp.float32)[:, None]
    div = jnp.exp(jnp.arange(0, d_model, 2, dtype=jnp.float32) * (-math.log(10000.0) / d_model))
    pe = jnp.zeros((max_len, d_model), jnp.float32)
    pe = pe.at[:, 0::2].set(jnp.sin(pos * div))
    pe = pe.at[:, 1::2].set(jnp.cos(pos * div))
    return pe


# --------------------------------------------------------------------------------------
# Model forward pass (glue in JAX, compute in fused Pallas kernels)
# --------------------------------------------------------------------------------------

def split_heads(x, h):
    # TODO(synk): fold split/merge into the attention kernel for d_k >= 128 (lane-dense blocks).
    B, T, D = x.shape
    dk = D // h
    return x.reshape(B, T, h, dk).transpose(0, 2, 1, 3)      # (B, h, T, dk)


def merge_heads(x):
    B, h, T, dk = x.shape
    return x.transpose(0, 2, 1, 3).reshape(B, T, h * dk)


def self_attention_sublayer(attn_p, ln_p, x, mask, h):
    """x = x + Wo(MHA(LN(x), LN(x), LN(x), mask))  -- fused LN+QKV, fused residual+Wo."""
    B, T, D = x.shape
    x2 = x.reshape(B * T, D)
    qkv = pallas_ln_linear(x2, ln_p["g"], ln_p["b"], attn_p["qkv_w"], attn_p["qkv_b"])
    q, k, v = jnp.split(qkv.reshape(B, T, 3 * D), 3, axis=-1)
    a = pallas_attention(split_heads(q, h), split_heads(k, h), split_heads(v, h), mask)
    a = merge_heads(a).reshape(B * T, D)
    return pallas_linear_residual(a, attn_p["wo_w"], attn_p["wo_b"], x2).reshape(B, T, D)


def cross_attention_sublayer(attn_p, ln_p, x, memory, mask, h):
    """x = x + Wo(MHA(LN(x), memory, memory, mask))  -- fused LN+q, fused K|V, fused residual+Wo."""
    B, Tq, D = x.shape
    Tk = memory.shape[1]
    x2 = x.reshape(B * Tq, D)
    q = pallas_ln_linear(x2, ln_p["g"], ln_p["b"], attn_p["q_w"], attn_p["q_b"]).reshape(B, Tq, D)
    kv = pallas_linear(memory.reshape(B * Tk, D), attn_p["kv_w"], attn_p["kv_b"]).reshape(B, Tk, 2 * D)
    k, v = jnp.split(kv, 2, axis=-1)
    a = pallas_attention(split_heads(q, h), split_heads(k, h), split_heads(v, h), mask)
    a = merge_heads(a).reshape(B * Tq, D)
    return pallas_linear_residual(a, attn_p["wo_w"], attn_p["wo_b"], x2).reshape(B, Tq, D)


def feed_forward_sublayer(ff_p, ln_p, x):
    """x = x + W2(relu(W1(LN(x))))  -- fused LN+W1(+ReLU), fused residual+W2."""
    B, T, D = x.shape
    x2 = x.reshape(B * T, D)
    hdn = pallas_ln_linear(x2, ln_p["g"], ln_p["b"], ff_p["w1_w"], ff_p["w1_b"], relu=True)
    return pallas_linear_residual(hdn, ff_p["w2_w"], ff_p["w2_b"], x2).reshape(B, T, D)


def encoder_layer(p, x, src_mask, h):
    x = self_attention_sublayer(p["self_attn"], p["ln1"], x, src_mask, h)
    x = feed_forward_sublayer(p["ff"], p["ln2"], x)
    return x


def decoder_layer(p, x, memory, src_mask, tgt_mask, h):
    x = self_attention_sublayer(p["self_attn"], p["ln1"], x, tgt_mask, h)
    x = cross_attention_sublayer(p["src_attn"], p["ln2"], x, memory, src_mask, h)
    x = feed_forward_sublayer(p["ff"], p["ln3"], x)
    return x


def embed(lut, tokens, pe, d_model):
    # Embeddings: lut(x) * sqrt(d_model) + positional encoding  (XLA gather glue)
    x = jnp.take(lut, tokens, axis=0) * math.sqrt(d_model)
    return x + pe[None, : tokens.shape[1], :]


def final_norm(p, x):
    B, T, D = x.shape
    return pallas_layernorm(x.reshape(B * T, D), p["g"], p["b"]).reshape(B, T, D)


def encode(params, src, src_mask, pe, d_model, h):
    x = embed(params["src_emb"], src, pe, d_model)
    for lp in params["enc_layers"]:
        x = encoder_layer(lp, x, src_mask, h)
    return final_norm(params["enc_norm"], x)


def decode(params, memory, src_mask, tgt, tgt_mask, pe, d_model, h):
    x = embed(params["tgt_emb"], tgt, pe, d_model)
    for lp in params["dec_layers"]:
        x = decoder_layer(lp, x, memory, src_mask, tgt_mask, h)
    return final_norm(params["dec_norm"], x)


def encoder_decoder_forward(params, src, tgt, src_mask, tgt_mask, pe, d_model, h):
    memory = encode(params, src, src_mask, pe, d_model, h)
    return decode(params, memory, src_mask, tgt, tgt_mask, pe, d_model, h)


# --------------------------------------------------------------------------------------

if __name__ == "__main__":
    SRC_VOCAB = TGT_VOCAB = 16
    D_MODEL, D_FF, H, N_LAYERS = 32, 64, 4, 2
    B, T_SRC, T_TGT = 2, 8, 8

    key = jax.random.PRNGKey(0)
    kp, ks, kt = jax.random.split(key, 3)

    params = init_model(kp, SRC_VOCAB, TGT_VOCAB, D_MODEL, D_FF, N_LAYERS)
    pe = positional_encoding(64, D_MODEL)

    src = jax.random.randint(ks, (B, T_SRC), 1, SRC_VOCAB)
    tgt = jax.random.randint(kt, (B, T_TGT), 1, TGT_VOCAB)
    src_mask = jnp.ones((B, 1, T_SRC), dtype=jnp.int32)
    subsequent = jnp.tril(jnp.ones((T_TGT, T_TGT), dtype=jnp.int32))
    tgt_mask = jnp.broadcast_to(subsequent[None, :, :], (B, T_TGT, T_TGT))

    fwd = jax.jit(functools.partial(encoder_decoder_forward, pe=pe, d_model=D_MODEL, h=H))
    out = fwd(params, src, tgt, src_mask, tgt_mask)
    out = jax.block_until_ready(out)

    assert out.shape == (B, T_TGT, D_MODEL)
    assert bool(jnp.all(jnp.isfinite(out)))
    print("KERNEL_OK")
</pallas_src>

<mosaic_0001>
module attributes {stable_mosaic.version = 11 : i64} {
  func.func @_attention_kernel(%arg0: i32, %arg1: i32, %arg2: memref<1x4x8x8xbf16, #tpu.memory_space<vmem>>, %arg3: memref<1x4x8x8xbf16, #tpu.memory_space<vmem>>, %arg4: memref<1x4x8x8xbf16, #tpu.memory_space<vmem>>, %arg5: memref<1x8x8xi32, #tpu.memory_space<vmem>>, %arg6: memref<1x4x8x8xbf16, #tpu.memory_space<vmem>>) attributes {dimension_semantics = [#tpu.dimension_semantics<parallel>, #tpu.dimension_semantics<parallel>], iteration_bounds = array<i64: 2, 1>, scalar_prefetch = 0 : i64, scratch_operands = 0 : i64, tpu.core_type = #tpu.core_type<tc>, window_params = [{transform_indices = @transform_0, window_bounds = array<i64: 1, 4, 8, 8>}, {transform_indices = @transform_1, window_bounds = array<i64: 1, 4, 8, 8>}, {transform_indices = @transform_2, window_bounds = array<i64: 1, 4, 8, 8>}, {transform_indices = @transform_3, window_bounds = array<i64: 1, 8, 8>}, {transform_indices = @transform_4, window_bounds = array<i64: 1, 4, 8, 8>}]} {
    %c0 = arith.constant 0 : index
    %c0_0 = arith.constant 0 : index
    %c0_1 = arith.constant 0 : index
    %c0_2 = arith.constant 0 : index
    %0 = vector.load %arg2[%c0, %c0_0, %c0_1, %c0_2] : memref<1x4x8x8xbf16, #tpu.memory_space<vmem>>, vector<1x4x8x8xbf16>
    %1 = vector.shape_cast %0 : vector<1x4x8x8xbf16> to vector<4x8x8xbf16>
    %c0_3 = arith.constant 0 : index
    %c0_4 = arith.constant 0 : index
    %c0_5 = arith.constant 0 : index
    %c0_6 = arith.constant 0 : index
    %2 = vector.load %arg3[%c0_3, %c0_4, %c0_5, %c0_6] : memref<1x4x8x8xbf16, #tpu.memory_space<vmem>>, vector<1x4x8x8xbf16>
    %3 = vector.shape_cast %2 : vector<1x4x8x8xbf16> to vector<4x8x8xbf16>
    %c0_7 = arith.constant 0 : index
    %c0_8 = arith.constant 0 : index
    %c0_9 = arith.constant 0 : index
    %c0_10 = arith.constant 0 : index
    %4 = vector.load %arg4[%c0_7, %c0_8, %c0_9, %c0_10] : memref<1x4x8x8xbf16, #tpu.memory_space<vmem>>, vector<1x4x8x8xbf16>
    %5 = vector.shape_cast %4 : vector<1x4x8x8xbf16> to vector<4x8x8xbf16>
    %c0_11 = arith.constant 0 : index
    %c0_12 = arith.constant 0 : index
    %c0_13 = arith.constant 0 : index
    %6 = vector.load %arg5[%c0_11, %c0_12, %c0_13] : memref<1x8x8xi32, #tpu.memory_space<vmem>>, vector<1x8x8xi32>
    %7 = vector.shape_cast %6 : vector<1x8x8xi32> to vector<8x8xi32>
    "tpu.trace_start"() <{level = 10 : i32, message = "gqd,gkd->gqk"}> : () -> ()
    %cst = arith.constant dense<0.000000e+00> : vector<4x8x8xf32>
    %8 = tpu.matmul %1, %3, %cst {dimension_numbers = #tpu.dot_dimension_numbers<[2], [2], [1], [1], [0, 0, 0, 1, 1, 1], [0], [0]>} : vector<4x8x8xbf16>, vector<4x8x8xbf16>, vector<4x8x8xf32> -> vector<4x8x8xf32>
    "tpu.trace_stop"() : () -> ()
    %cst_14 = arith.constant 0.353553385 : f32
    %9 = vector.broadcast %cst_14 : f32 to vector<4x8x8xf32>
    %10 = arith.mulf %8, %9 : vector<4x8x8xf32>
    %11 = vector.shape_cast %7 : vector<8x8xi32> to vector<1x8x8xi32>
    %c0_i32 = arith.constant 0 : i32
    %12 = vector.broadcast %c0_i32 : i32 to vector<1x8x8xi32>
    %13 = arith.cmpi eq, %11, %12 : vector<1x8x8xi32>
    %cst_15 = arith.constant -1.000000e+09 : f32
    %14 = vector.shape_cast %13 : vector<1x8x8xi1> to vector<1x8x8xi1>
    %15 = vector.broadcast %14 : vector<1x8x8xi1> to vector<4x8x8xi1>
    %16 = vector.broadcast %cst_15 : f32 to vector<4x8x8xf32>
    %17 = arith.select %15, %16, %10 : vector<4x8x8xi1>, vector<4x8x8xf32>
    %cst_16 = arith.constant dense<0xFF800000> : vector<4x8xf32>
    %18 = vector.multi_reduction <maximumf>, %17, %cst_16 [2] : vector<4x8x8xf32> to vector<4x8xf32>
    %19 = vector.shape_cast %18 : vector<4x8xf32> to vector<4x8x1xf32>
    %20 = vector.broadcast %19 : vector<4x8x1xf32> to vector<4x8x8xf32>
    %21 = arith.subf %17, %20 : vector<4x8x8xf32>
    %22 = math.exp %21 : vector<4x8x8xf32>
    %cst_17 = arith.constant dense<0.000000e+00> : vector<4x8xf32>
    %23 = vector.multi_reduction <add>, %22, %cst_17 [2] : vector<4x8x8xf32> to vector<4x8xf32>
    %24 = vector.shape_cast %23 : vector<4x8xf32> to vector<4x8x1xf32>
    %25 = tpu.reciprocal %24 {approx = true} : vector<4x8x1xf32> -> vector<4x8x1xf32>
    %26 = vector.broadcast %25 : vector<4x8x1xf32> to vector<4x8x8xf32>
    %27 = arith.mulf %22, %26 : vector<4x8x8xf32>
    %28 = arith.truncf %27 : vector<4x8x8xf32> to vector<4x8x8xbf16>
    "tpu.trace_start"() <{level = 10 : i32, message = "gqk,gkd->gqd"}> : () -> ()
    %cst_18 = arith.constant dense<0.000000e+00> : vector<4x8x8xf32>
    %29 = tpu.matmul %28, %5, %cst_18 {dimension_numbers = #tpu.dot_dimension_numbers<[2], [1], [1], [2], [0, 0, 0, 1, 1, 2], [0], [0]>} : vector<4x8x8xbf16>, vector<4x8x8xbf16>, vector<4x8x8xf32> -> vector<4x8x8xf32>
    "tpu.trace_stop"() : () -> ()
    %30 = arith.truncf %29 : vector<4x8x8xf32> to vector<4x8x8xbf16>
    %c0_19 = arith.constant 0 : index
    %c0_20 = arith.constant 0 : index
    %c0_21 = arith.constant 0 : index
    %c0_22 = arith.constant 0 : index
    %31 = vector.load %arg6[%c0_19, %c0_20, %c0_21, %c0_22] : memref<1x4x8x8xbf16, #tpu.memory_space<vmem>>, vector<1x4x8x8xbf16>
    %32 = vector.shape_cast %31 : vector<1x4x8x8xbf16> to vector<4x8x8xbf16>
    %33 = vector.shape_cast %30 : vector<4x8x8xbf16> to vector<1x4x8x8xbf16>
    tpu.vector_store %arg6[%c0_19, %c0_20, %c0_21, %c0_22], %33 {strides = array<i32>} : memref<1x4x8x8xbf16, #tpu.memory_space<vmem>>, vector<1x4x8x8xbf16>,
    return
  }
  func.func @transform_0(%arg0: i32, %arg1: i32) -> (i32, i32, i32, i32) {
    %c0_i32 = arith.constant 0 : i32
    %c0_i32_0 = arith.constant 0 : i32
    %c0_i32_1 = arith.constant 0 : i32
    return %arg0, %arg1, %c0_i32, %c0_i32_0 : i32, i32, i32, i32
  }
  func.func @transform_1(%arg0: i32, %arg1: i32) -> (i32, i32, i32, i32) {
    %c0_i32 = arith.constant 0 : i32
    %c0_i32_0 = arith.constant 0 : i32
    %c0_i32_1 = arith.constant 0 : i32
    return %arg0, %arg1, %c0_i32, %c0_i32_0 : i32, i32, i32, i32
  }
  func.func @transform_2(%arg0: i32, %arg1: i32) -> (i32, i32, i32, i32) {
    %c0_i32 = arith.constant 0 : i32
    %c0_i32_0 = arith.constant 0 : i32
    %c0_i32_1 = arith.constant 0 : i32
    return %arg0, %arg1, %c0_i32, %c0_i32_0 : i32, i32, i32, i32
  }
  func.func @transform_3(%arg0: i32, %arg1: i32) -> (i32, i32, i32) {
    %c0_i32 = arith.constant 0 : i32
    %c0_i32_0 = arith.constant 0 : i32
    %c0_i32_1 = arith.constant 0 : i32
    return %arg0, %c0_i32, %c0_i32_0 : i32, i32, i32
  }
  func.func @transform_4(%arg0: i32, %arg1: i32) -> (i32, i32, i32, i32) {
    %c0_i32 = arith.constant 0 : i32
    %c0_i32_0 = arith.constant 0 : i32
    %c0_i32_1 = arith.constant 0 : i32
    return %arg0, %arg1, %c0_i32, %c0_i32_0 : i32, i32, i32, i32
  }
}

module attributes {stable_mosaic.version = 11 : i64} {
  func.func @_ln_linear_kernel(%arg0: i32, %arg1: memref<8x32xf32, #tpu.memory_space<vmem>>, %arg2: memref<1x32xf32, #tpu.memory_space<vmem>>, %arg3: memref<1x32xf32, #tpu.memory_space<vmem>>, %arg4: memref<32x96xbf16, #tpu.memory_space<vmem>>, %arg5: memref<1x96xf32, #tpu.memory_space<vmem>>, %arg6: memref<8x96xbf16, #tpu.memory_space<vmem>>) attributes {dimension_semantics = [#tpu.dimension_semantics<parallel>], iteration_bounds = array<i64: 2>, scalar_prefetch = 0 : i64, scratch_operands = 0 : i64, tpu.core_type = #tpu.core_type<tc>, window_params = [{transform_indices = @transform_0, window_bounds = array<i64: 8, 32>}, {pipeline_mode = #tpu.pipeline_mode<synchronous>, transform_indices = @transform_1, window_bounds = array<i64: 1, 32>}, {pipeline_mode = #tpu.pipeline_mode<synchronous>, transform_indices = @transform_2, window_bounds = array<i64: 1, 32>}, {pipeline_mode = #tpu.pipeline_mode<synchronous>, transform_indices = @transform_3, window_bounds = array<i64: 32, 96>}, {pipeline_mode = #tpu.pipeline_mode<synchronous>, transform_indices = @transform_4, window_bounds = array<i64: 1, 96>}, {transform_indices = @transform_5, window_bounds = array<i64: 8, 96>}]} {
    %c0 = arith.constant 0 : index
    %c0_0 = arith.constant 0 : index
    %0 = vector.load %arg1[%c0, %c0_0] : memref<8x32xf32, #tpu.memory_space<vmem>>, vector<8x32xf32>
    %cst = arith.constant dense<0.000000e+00> : vector<8xf32>
    %1 = vector.multi_reduction <add>, %0, %cst [1] : vector<8x32xf32> to vector<8xf32>
    %2 = vector.shape_cast %1 : vector<8xf32> to vector<8x1xf32>
    %cst_1 = arith.constant 3.200000e+01 : f32
    %3 = vector.broadcast %cst_1 : f32 to vector<8x1xf32>
    %4 = arith.divf %2, %3 : vector<8x1xf32>
    %5 = vector.broadcast %4 : vector<8x1xf32> to vector<8x32xf32>
    %6 = arith.subf %0, %5 : vector<8x32xf32>
    %7 = arith.mulf %6, %6 : vector<8x32xf32>
    %cst_2 = arith.constant dense<0.000000e+00> : vector<8xf32>
    %8 = vector.multi_reduction <add>, %7, %cst_2 [1] : vector<8x32xf32> to vector<8xf32>
    %9 = vector.shape_cast %8 : vector<8xf32> to vector<8x1xf32>
    %cst_3 = arith.constant 3.100000e+01 : f32
    %10 = vector.broadcast %cst_3 : f32 to vector<8x1xf32>
    %11 = arith.divf %9, %10 : vector<8x1xf32>
    %12 = math.sqrt %11 : vector<8x1xf32>
    %cst_4 = arith.constant 9.99999997E-7 : f32
    %13 = vector.broadcast %cst_4 : f32 to vector<8x1xf32>
    %14 = arith.addf %12, %13 : vector<8x1xf32>
    %15 = tpu.reciprocal %14 : vector<8x1xf32> -> vector<8x1xf32>
    %c0_5 = arith.constant 0 : index
    %c0_6 = arith.constant 0 : index
    %16 = vector.load %arg2[%c0_5, %c0_6] : memref<1x32xf32, #tpu.memory_space<vmem>>, vector<1x32xf32>
    %17 = vector.broadcast %4 : vector<8x1xf32> to vector<8x32xf32>
    %18 = arith.subf %0, %17 : vector<8x32xf32>
    %19 = vector.broadcast %16 : vector<1x32xf32> to vector<8x32xf32>
    %20 = arith.mulf %19, %18 : vector<8x32xf32>
    %21 = vector.broadcast %15 : vector<8x1xf32> to vector<8x32xf32>
    %22 = arith.mulf %20, %21 : vector<8x32xf32>
    %c0_7 = arith.constant 0 : index
    %c0_8 = arith.constant 0 : index
    %23 = vector.load %arg3[%c0_7, %c0_8] : memref<1x32xf32, #tpu.memory_space<vmem>>, vector<1x32xf32>
    %24 = vector.broadcast %23 : vector<1x32xf32> to vector<8x32xf32>
    %25 = arith.addf %22, %24 : vector<8x32xf32>
    %26 = arith.truncf %25 : vector<8x32xf32> to vector<8x32xbf16>
    %c0_9 = arith.constant 0 : index
    %c0_10 = arith.constant 0 : index
    %27 = vector.load %arg4[%c0_9, %c0_10] : memref<32x96xbf16, #tpu.memory_space<vmem>>, vector<32x96xbf16>
    %cst_11 = arith.constant dense<0.000000e+00> : vector<8x96xf32>
    %28 = tpu.matmul %26, %27, %cst_11 {dimension_numbers = #tpu.dot_dimension_numbers<[1], [0], [0], [1], [0, 0, 1, 1], [], []>} : vector<8x32xbf16>, vector<32x96xbf16>, vector<8x96xf32> -> vector<8x96xf32>
    %c0_12 = arith.constant 0 : index
    %c0_13 = arith.constant 0 : index
    %29 = vector.load %arg5[%c0_12, %c0_13] : memref<1x96xf32, #tpu.memory_space<vmem>>, vector<1x96xf32>
    %30 = vector.broadcast %29 : vector<1x96xf32> to vector<8x96xf32>
    %31 = arith.addf %28, %30 : vector<8x96xf32>
    %32 = arith.truncf %31 : vector<8x96xf32> to vector<8x96xbf16>
    %c0_14 = arith.constant 0 : index
    %c0_15 = arith.constant 0 : index
    %33 = vector.load %arg6[%c0_14, %c0_15] : memref<8x96xbf16, #tpu.memory_space<vmem>>, vector<8x96xbf16>
    tpu.vector_store %arg6[%c0_14, %c0_15], %32 {strides = array<i32>} : memref<8x96xbf16, #tpu.memory_space<vmem>>, vector<8x96xbf16>,
    return
  }
  func.func @transform_0(%arg0: i32) -> (i32, i32) {
    %c0_i32 = arith.constant 0 : i32
    %c0_i32_0 = arith.constant 0 : i32
    return %arg0, %c0_i32 : i32, i32
  }
  func.func @transform_1(%arg0: i32) -> (i32, i32) {
    %c0_i32 = arith.constant 0 : i32
    %c0_i32_0 = arith.constant 0 : i32
    %c0_i32_1 = arith.constant 0 : i32
    return %c0_i32, %c0_i32_0 : i32, i32
  }
  func.func @transform_2(%arg0: i32) -> (i32, i32) {
    %c0_i32 = arith.constant 0 : i32
    %c0_i32_0 = arith.constant 0 : i32
    %c0_i32_1 = arith.constant 0 : i32
    return %c0_i32, %c0_i32_0 : i32, i32
  }
  func.func @transform_3(%arg0: i32) -> (i32, i32) {
    %c0_i32 = arith.constant 0 : i32
    %c0_i32_0 = arith.constant 0 : i32
    %c0_i32_1 = arith.constant 0 : i32
    return %c0_i32, %c0_i32_0 : i32, i32
  }
  func.func @transform_4(%arg0: i32) -> (i32, i32) {
    %c0_i32 = arith.constant 0 : i32
    %c0_i32_0 = arith.constant 0 : i32
    %c0_i32_1 = arith.constant 0 : i32
    return %c0_i32, %c0_i32_0 : i32, i32
  }
  func.func @transform_5(%arg0: i32) -> (i32, i32) {
    %c0_i32 = arith.constant 0 : i32
    %c0_i32_0 = arith.constant 0 : i32
    return %arg0, %c0_i32 : i32, i32
  }
}

module attributes {stable_mosaic.version = 11 : i64} {
  func.func @_linear_residual_kernel(%arg0: i32, %arg1: memref<8x32xbf16, #tpu.memory_space<vmem>>, %arg2: memref<32x32xbf16, #tpu.memory_space<vmem>>, %arg3: memref<1x32xf32, #tpu.memory_space<vmem>>, %arg4: memref<8x32xf32, #tpu.memory_space<vmem>>, %arg5: memref<8x32xf32, #tpu.memory_space<vmem>>) attributes {dimension_semantics = [#tpu.dimension_semantics<parallel>], iteration_bounds = array<i64: 2>, scalar_prefetch = 0 : i64, scratch_operands = 0 : i64, tpu.core_type = #tpu.core_type<tc>, window_params = [{transform_indices = @transform_0, window_bounds = array<i64: 8, 32>}, {pipeline_mode = #tpu.pipeline_mode<synchronous>, transform_indices = @transform_1, window_bounds = array<i64: 32, 32>}, {pipeline_mode = #tpu.pipeline_mode<synchronous>, transform_indices = @transform_2, window_bounds = array<i64: 1, 32>}, {transform_indices = @transform_3, window_bounds = array<i64: 8, 32>}, {transform_indices = @transform_4, window_bounds = array<i64: 8, 32>}]} {
    %c0 = arith.constant 0 : index
    %c0_0 = arith.constant 0 : index
    %0 = vector.load %arg1[%c0, %c0_0] : memref<8x32xbf16, #tpu.memory_space<vmem>>, vector<8x32xbf16>
    %c0_1 = arith.constant 0 : index
    %c0_2 = arith.constant 0 : index
    %1 = vector.load %arg2[%c0_1, %c0_2] : memref<32x32xbf16, #tpu.memory_space<vmem>>, vector<32x32xbf16>
    %cst = arith.constant dense<0.000000e+00> : vector<8x32xf32>
    %2 = tpu.matmul %0, %1, %cst {dimension_numbers = #tpu.dot_dimension_numbers<[1], [0], [0], [1], [0, 0, 1, 1], [], []>} : vector<8x32xbf16>, vector<32x32xbf16>, vector<8x32xf32> -> vector<8x32xf32>
    %c0_3 = arith.constant 0 : index
    %c0_4 = arith.constant 0 : index
    %3 = vector.load %arg3[%c0_3, %c0_4] : memref<1x32xf32, #tpu.memory_space<vmem>>, vector<1x32xf32>
    %4 = vector.broadcast %3 : vector<1x32xf32> to vector<8x32xf32>
    %5 = arith.addf %2, %4 : vector<8x32xf32>
    %c0_5 = arith.constant 0 : index
    %c0_6 = arith.constant 0 : index
    %6 = vector.load %arg4[%c0_5, %c0_6] : memref<8x32xf32, #tpu.memory_space<vmem>>, vector<8x32xf32>
    %7 = arith.addf %5, %6 : vector<8x32xf32>
    %c0_7 = arith.constant 0 : index
    %c0_8 = arith.constant 0 : index
    %8 = vector.load %arg5[%c0_7, %c0_8] : memref<8x32xf32, #tpu.memory_space<vmem>>, vector<8x32xf32>
    tpu.vector_store %arg5[%c0_7, %c0_8], %7 {strides = array<i32>} : memref<8x32xf32, #tpu.memory_space<vmem>>, vector<8x32xf32>,
    return
  }
  func.func @transform_0(%arg0: i32) -> (i32, i32) {
    %c0_i32 = arith.constant 0 : i32
    %c0_i32_0 = arith.constant 0 : i32
    return %arg0, %c0_i32 : i32, i32
  }
  func.func @transform_1(%arg0: i32) -> (i32, i32) {
    %c0_i32 = arith.constant 0 : i32
    %c0_i32_0 = arith.constant 0 : i32
    %c0_i32_1 = arith.constant 0 : i32
    return %c0_i32, %c0_i32_0 : i32, i32
  }
  func.func @transform_2(%arg0: i32) -> (i32, i32) {
    %c0_i32 = arith.constant 0 : i32
    %c0_i32_0 = arith.constant 0 : i32
    %c0_i32_1 = arith.constant 0 : i32
    return %c0_i32, %c0_i32_0 : i32, i32
  }
  func.func @transform_3(%arg0: i32) -> (i32, i32) {
    %c0_i32 = arith.constant 0 : i32
    %c0_i32_0 = arith.constant 0 : i32
    return %arg0, %c0_i32 : i32, i32
  }
  func.func @transform_4(%arg0: i32) -> (i32, i32) {
    %c0_i32 = arith.constant 0 : i32
    %c0_i32_0 = arith.constant 0 : i32
    return %arg0, %c0_i32 : i32, i32
  }
}

module attributes {stable_mosaic.version = 11 : i64} {
  func.func @_ln_linear_kernel(%arg0: i32, %arg1: memref<8x32xf32, #tpu.memory_space<vmem>>, %arg2: memref<1x32xf32, #tpu.memory_space<vmem>>, %arg3: memref<1x32xf32, #tpu.memory_space<vmem>>, %arg4: memref<32x32xbf16, #tpu.memory_space<vmem>>, %arg5: memref<1x32xf32, #tpu.memory_space<vmem>>, %arg6: memref<8x32xbf16, #tpu.memory_space<vmem>>) attributes {dimension_semantics = [#tpu.dimension_semantics<parallel>], iteration_bounds = array<i64: 2>, scalar_prefetch = 0 : i64, scratch_operands = 0 : i64, tpu.core_type = #tpu.core_type<tc>, window_params = [{transform_indices = @transform_0, window_bounds = array<i64: 8, 32>}, {pipeline_mode = #tpu.pipeline_mode<synchronous>, transform_indices = @transform_1, window_bounds = array<i64: 1, 32>}, {pipeline_mode = #tpu.pipeline_mode<synchronous>, transform_indices = @transform_2, window_bounds = array<i64: 1, 32>}, {pipeline_mode = #tpu.pipeline_mode<synchronous>, transform_indices = @transform_3, window_bounds = array<i64: 32, 32>}, {pipeline_mode = #tpu.pipeline_mode<synchronous>, transform_indices = @transform_4, window_bounds = array<i64: 1, 32>}, {transform_indices = @transform_5, window_bounds = array<i64: 8, 32>}]} {
    %c0 = arith.constant 0 : index
    %c0_0 = arith.constant 0 : index
    %0 = vector.load %arg1[%c0, %c0_0] : memref<8x32xf32, #tpu.memory_space<vmem>>, vector<8x32xf32>
    %cst = arith.constant dense<0.000000e+00> : vector<8xf32>
    %1 = vector.multi_reduction <add>, %0, %cst [1] : vector<8x32xf32> to vector<8xf32>
    %2 = vector.shape_cast %1 : vector<8xf32> to vector<8x1xf32>
    %cst_1 = arith.constant 3.200000e+01 : f32
    %3 = vector.broadcast %cst_1 : f32 to vector<8x1xf32>
    %4 = arith.divf %2, %3 : vector<8x1xf32>
    %5 = vector.broadcast %4 : vector<8x1xf32> to vector<8x32xf32>
    %6 = arith.subf %0, %5 : vector<8x32xf32>
    %7 = arith.mulf %6, %6 : vector<8x32xf32>
    %cst_2 = arith.constant dense<0.000000e+00> : vector<8xf32>
    %8 = vector.multi_reduction <add>, %7, %cst_2 [1] : vector<8x32xf32> to vector<8xf32>
    %9 = vector.shape_cast %8 : vector<8xf32> to vector<8x1xf32>
    %cst_3 = arith.constant 3.100000e+01 : f32
    %10 = vector.broadcast %cst_3 : f32 to vector<8x1xf32>
    %11 = arith.divf %9, %10 : vector<8x1xf32>
    %12 = math.sqrt %11 : vector<8x1xf32>
    %cst_4 = arith.constant 9.99999997E-7 : f32
    %13 = vector.broadcast %cst_4 : f32 to vector<8x1xf32>
    %14 = arith.addf %12, %13 : vector<8x1xf32>
    %15 = tpu.reciprocal %14 : vector<8x1xf32> -> vector<8x1xf32>
    %c0_5 = arith.constant 0 : index
    %c0_6 = arith.constant 0 : index
    %16 = vector.load %arg2[%c0_5, %c0_6] : memref<1x32xf32, #tpu.memory_space<vmem>>, vector<1x32xf32>
    %17 = vector.broadcast %4 : vector<8x1xf32> to vector<8x32xf32>
    %18 = arith.subf %0, %17 : vector<8x32xf32>
    %19 = vector.broadcast %16 : vector<1x32xf32> to vector<8x32xf32>
    %20 = arith.mulf %19, %18 : vector<8x32xf32>
    %21 = vector.broadcast %15 : vector<8x1xf32> to vector<8x32xf32>
    %22 = arith.mulf %20, %21 : vector<8x32xf32>
    %c0_7 = arith.constant 0 : index
    %c0_8 = arith.constant 0 : index
    %23 = vector.load %arg3[%c0_7, %c0_8] : memref<1x32xf32, #tpu.memory_space<vmem>>, vector<1x32xf32>
    %24 = vector.broadcast %23 : vector<1x32xf32> to vector<8x32xf32>
    %25 = arith.addf %22, %24 : vector<8x32xf32>
    %26 = arith.truncf %25 : vector<8x32xf32> to vector<8x32xbf16>
    %c0_9 = arith.constant 0 : index
    %c0_10 = arith.constant 0 : index
    %27 = vector.load %arg4[%c0_9, %c0_10] : memref<32x32xbf16, #tpu.memory_space<vmem>>, vector<32x32xbf16>
    %cst_11 = arith.constant dense<0.000000e+00> : vector<8x32xf32>
    %28 = tpu.matmul %26, %27, %cst_11 {dimension_numbers = #tpu.dot_dimension_numbers<[1], [0], [0], [1], [0, 0, 1, 1], [], []>} : vector<8x32xbf16>, vector<32x32xbf16>, vector<8x32xf32> -> vector<8x32xf32>
    %c0_12 = arith.constant 0 : index
    %c0_13 = arith.constant 0 : index
    %29 = vector.load %arg5[%c0_12, %c0_13] : memref<1x32xf32, #tpu.memory_space<vmem>>, vector<1x32xf32>
    %30 = vector.broadcast %29 : vector<1x32xf32> to vector<8x32xf32>
    %31 = arith.addf %28, %30 : vector<8x32xf32>
    %32 = arith.truncf %31 : vector<8x32xf32> to vector<8x32xbf16>
    %c0_14 = arith.constant 0 : index
    %c0_15 = arith.constant 0 : index
    %33 = vector.load %arg6[%c0_14, %c0_15] : memref<8x32xbf16, #tpu.memory_space<vmem>>, vector<8x32xbf16>
    tpu.vector_store %arg6[%c0_14, %c0_15], %32 {strides = array<i32>} : memref<8x32xbf16, #tpu.memory_space<vmem>>, vector<8x32xbf16>,
    return
  }
  func.func @transform_0(%arg0: i32) -> (i32, i32) {
    %c0_i32 = arith.constant 0 : i32
    %c0_i32_0 = arith.constant 0 : i32
    return %arg0, %c0_i32 : i32, i32
  }
  func.func @transform_1(%arg0: i32) -> (i32, i32) {
    %c0_i32 = arith.constant 0 : i32
    %c0_i32_0 = arith.constant 0 : i32
    %c0_i32_1 = arith.constant 0 : i32
    return %c0_i32, %c0_i32_0 : i32, i32
  }
  func.func @transform_2(%arg0: i32) -> (i32, i32) {
    %c0_i32 = arith.constant 0 : i32
    %c0_i32_0 = arith.constant 0 : i32
    %c0_i32_1 = arith.constant 0 : i32
    return %c0_i32, %c0_i32_0 : i32, i32
  }
  func.func @transform_3(%arg0: i32) -> (i32, i32) {
    %c0_i32 = arith.constant 0 : i32
    %c0_i32_0 = arith.constant 0 : i32
    %c0_i32_1 = arith.constant 0 : i32
    return %c0_i32, %c0_i32_0 : i32, i32
  }
  func.func @transform_4(%arg0: i32) -> (i32, i32) {
    %c0_i32 = arith.constant 0 : i32
    %c0_i32_0 = arith.constant 0 : i32
    %c0_i32_1 = arith.constant 0 : i32
    return %c0_i32, %c0_i32_0 : i32, i32
  }
  func.func @transform_5(%arg0: i32) -> (i32, i32) {
    %c0_i32 = arith.constant 0 : i32
    %c0_i32_0 = arith.constant 0 : i32
    return %arg0, %c0_i32 : i32, i32
  }
}

module attributes {stable_mosaic.version = 11 : i64} {
  func.func @_linear_residual_kernel(%arg0: i32, %arg1: memref<8x64xbf16, #tpu.memory_space<vmem>>, %arg2: memref<64x32xbf16, #tpu.memory_space<vmem>>, %arg3: memref<1x32xf32, #tpu.memory_space<vmem>>, %arg4: memref<8x32xf32, #tpu.memory_space<vmem>>, %arg5: memref<8x32xf32, #tpu.memory_space<vmem>>) attributes {dimension_semantics = [#tpu.dimension_semantics<parallel>], iteration_bounds = array<i64: 2>, scalar_prefetch = 0 : i64, scratch_operands = 0 : i64, tpu.core_type = #tpu.core_type<tc>, window_params = [{transform_indices = @transform_0, window_bounds = array<i64: 8, 64>}, {pipeline_mode = #tpu.pipeline_mode<synchronous>, transform_indices = @transform_1, window_bounds = array<i64: 64, 32>}, {pipeline_mode = #tpu.pipeline_mode<synchronous>, transform_indices = @transform_2, window_bounds = array<i64: 1, 32>}, {transform_indices = @transform_3, window_bounds = array<i64: 8, 32>}, {transform_indices = @transform_4, window_bounds = array<i64: 8, 32>}]} {
    %c0 = arith.constant 0 : index
    %c0_0 = arith.constant 0 : index
    %0 = vector.load %arg1[%c0, %c0_0] : memref<8x64xbf16, #tpu.memory_space<vmem>>, vector<8x64xbf16>
    %c0_1 = arith.constant 0 : index
    %c0_2 = arith.constant 0 : index
    %1 = vector.load %arg2[%c0_1, %c0_2] : memref<64x32xbf16, #tpu.memory_space<vmem>>, vector<64x32xbf16>
    %cst = arith.constant dense<0.000000e+00> : vector<8x32xf32>
    %2 = tpu.matmul %0, %1, %cst {dimension_numbers = #tpu.dot_dimension_numbers<[1], [0], [0], [1], [0, 0, 1, 1], [], []>} : vector<8x64xbf16>, vector<64x32xbf16>, vector<8x32xf32> -> vector<8x32xf32>
    %c0_3 = arith.constant 0 : index
    %c0_4 = arith.constant 0 : index
    %3 = vector.load %arg3[%c0_3, %c0_4] : memref<1x32xf32, #tpu.memory_space<vmem>>, vector<1x32xf32>
    %4 = vector.broadcast %3 : vector<1x32xf32> to vector<8x32xf32>
    %5 = arith.addf %2, %4 : vector<8x32xf32>
    %c0_5 = arith.constant 0 : index
    %c0_6 = arith.constant 0 : index
    %6 = vector.load %arg4[%c0_5, %c0_6] : memref<8x32xf32, #tpu.memory_space<vmem>>, vector<8x32xf32>
    %7 = arith.addf %5, %6 : vector<8x32xf32>
    %c0_7 = arith.constant 0 : index
    %c0_8 = arith.constant 0 : index
    %8 = vector.load %arg5[%c0_7, %c0_8] : memref<8x32xf32, #tpu.memory_space<vmem>>, vector<8x32xf32>
    tpu.vector_store %arg5[%c0_7, %c0_8], %7 {strides = array<i32>} : memref<8x32xf32, #tpu.memory_space<vmem>>, vector<8x32xf32>,
    return
  }
  func.func @transform_0(%arg0: i32) -> (i32, i32) {
    %c0_i32 = arith.constant 0 : i32
    %c0_i32_0 = arith.constant 0 : i32
    return %arg0, %c0_i32 : i32, i32
  }
  func.func @transform_1(%arg0: i32) -> (i32, i32) {
    %c0_i32 = arith.constant 0 : i32
    %c0_i32_0 = arith.constant 0 : i32
    %c0_i32_1 = arith.constant 0 : i32
    return %c0_i32, %c0_i32_0 : i32, i32
  }
  func.func @transform_2(%arg0: i32) -> (i32, i32) {
    %c0_i32 = arith.constant 0 : i32
    %c0_i32_0 = arith.constant 0 : i32
    %c0_i32_1 = arith.constant 0 : i32
    return %c0_i32, %c0_i32_0 : i32, i32
  }
  func.func @transform_3(%arg0: i32) -> (i32, i32) {
    %c0_i32 = arith.constant 0 : i32
    %c0_i32_0 = arith.constant 0 : i32
    return %arg0, %c0_i32 : i32, i32
  }
  func.func @transform_4(%arg0: i32) -> (i32, i32) {
    %c0_i32 = arith.constant 0 : i32
    %c0_i32_0 = arith.constant 0 : i32
    return %arg0, %c0_i32 : i32, i32
  }
}

module attributes {stable_mosaic.version = 11 : i64} {
  func.func @_attention_kernel(%arg0: i32, %arg1: i32, %arg2: memref<1x4x8x8xbf16, #tpu.memory_space<vmem>>, %arg3: memref<1x4x8x8xbf16, #tpu.memory_space<vmem>>, %arg4: memref<1x4x8x8xbf16, #tpu.memory_space<vmem>>, %arg5: memref<1x1x8xi32, #tpu.memory_space<vmem>>, %arg6: memref<1x4x8x8xbf16, #tpu.memory_space<vmem>>) attributes {dimension_semantics = [#tpu.dimension_semantics<parallel>, #tpu.dimension_semantics<parallel>], iteration_bounds = array<i64: 2, 1>, scalar_prefetch = 0 : i64, scratch_operands = 0 : i64, tpu.core_type = #tpu.core_type<tc>, window_params = [{transform_indices = @transform_0, window_bounds = array<i64: 1, 4, 8, 8>}, {transform_indices = @transform_1, window_bounds = array<i64: 1, 4, 8, 8>}, {transform_indices = @transform_2, window_bounds = array<i64: 1, 4, 8, 8>}, {transform_indices = @transform_3, window_bounds = array<i64: 1, 1, 8>}, {transform_indices = @transform_4, window_bounds = array<i64: 1, 4, 8, 8>}]} {
    %c0 = arith.constant 0 : index
    %c0_0 = arith.constant 0 : index
    %c0_1 = arith.constant 0 : index
    %c0_2 = arith.constant 0 : index
    %0 = vector.load %arg2[%c0, %c0_0, %c0_1, %c0_2] : memref<1x4x8x8xbf16, #tpu.memory_space<vmem>>, vector<1x4x8x8xbf16>
    %1 = vector.shape_cast %0 : vector<1x4x8x8xbf16> to vector<4x8x8xbf16>
    %c0_3 = arith.constant 0 : index
    %c0_4 = arith.constant 0 : index
    %c0_5 = arith.constant 0 : index
    %c0_6 = arith.constant 0 : index
    %2 = vector.load %arg3[%c0_3, %c0_4, %c0_5, %c0_6] : memref<1x4x8x8xbf16, #tpu.memory_space<vmem>>, vector<1x4x8x8xbf16>
    %3 = vector.shape_cast %2 : vector<1x4x8x8xbf16> to vector<4x8x8xbf16>
    %c0_7 = arith.constant 0 : index
    %c0_8 = arith.constant 0 : index
    %c0_9 = arith.constant 0 : index
    %c0_10 = arith.constant 0 : index
    %4 = vector.load %arg4[%c0_7, %c0_8, %c0_9, %c0_10] : memref<1x4x8x8xbf16, #tpu.memory_space<vmem>>, vector<1x4x8x8xbf16>
    %5 = vector.shape_cast %4 : vector<1x4x8x8xbf16> to vector<4x8x8xbf16>
    %c0_11 = arith.constant 0 : index
    %c0_12 = arith.constant 0 : index
    %c0_13 = arith.constant 0 : index
    %6 = vector.load %arg5[%c0_11, %c0_12, %c0_13] : memref<1x1x8xi32, #tpu.memory_space<vmem>>, vector<1x1x8xi32>
    %7 = vector.shape_cast %6 : vector<1x1x8xi32> to vector<1x8xi32>
    "tpu.trace_start"() <{level = 10 : i32, message = "gqd,gkd->gqk"}> : () -> ()
    %cst = arith.constant dense<0.000000e+00> : vector<4x8x8xf32>
    %8 = tpu.matmul %1, %3, %cst {dimension_numbers = #tpu.dot_dimension_numbers<[2], [2], [1], [1], [0, 0, 0, 1, 1, 1], [0], [0]>} : vector<4x8x8xbf16>, vector<4x8x8xbf16>, vector<4x8x8xf32> -> vector<4x8x8xf32>
    "tpu.trace_stop"() : () -> ()
    %cst_14 = arith.constant 0.353553385 : f32
    %9 = vector.broadcast %cst_14 : f32 to vector<4x8x8xf32>
    %10 = arith.mulf %8, %9 : vector<4x8x8xf32>
    %11 = vector.shape_cast %7 : vector<1x8xi32> to vector<1x1x8xi32>
    %c0_i32 = arith.constant 0 : i32
    %12 = vector.broadcast %c0_i32 : i32 to vector<1x1x8xi32>
    %13 = arith.cmpi eq, %11, %12 : vector<1x1x8xi32>
    %cst_15 = arith.constant -1.000000e+09 : f32
    %14 = vector.shape_cast %13 : vector<1x1x8xi1> to vector<1x1x8xi1>
    %15 = vector.broadcast %14 : vector<1x1x8xi1> to vector<4x8x8xi1>
    %16 = vector.broadcast %cst_15 : f32 to vector<4x8x8xf32>
    %17 = arith.select %15, %16, %10 : vector<4x8x8xi1>, vector<4x8x8xf32>
    %cst_16 = arith.constant dense<0xFF800000> : vector<4x8xf32>
    %18 = vector.multi_reduction <maximumf>, %17, %cst_16 [2] : vector<4x8x8xf32> to vector<4x8xf32>
    %19 = vector.shape_cast %18 : vector<4x8xf32> to vector<4x8x1xf32>
    %20 = vector.broadcast %19 : vector<4x8x1xf32> to vector<4x8x8xf32>
    %21 = arith.subf %17, %20 : vector<4x8x8xf32>
    %22 = math.exp %21 : vector<4x8x8xf32>
    %cst_17 = arith.constant dense<0.000000e+00> : vector<4x8xf32>
    %23 = vector.multi_reduction <add>, %22, %cst_17 [2] : vector<4x8x8xf32> to vector<4x8xf32>
    %24 = vector.shape_cast %23 : vector<4x8xf32> to vector<4x8x1xf32>
    %25 = tpu.reciprocal %24 {approx = true} : vector<4x8x1xf32> -> vector<4x8x1xf32>
    %26 = vector.broadcast %25 : vector<4x8x1xf32> to vector<4x8x8xf32>
    %27 = arith.mulf %22, %26 : vector<4x8x8xf32>
    %28 = arith.truncf %27 : vector<4x8x8xf32> to vector<4x8x8xbf16>
    "tpu.trace_start"() <{level = 10 : i32, message = "gqk,gkd->gqd"}> : () -> ()
    %cst_18 = arith.constant dense<0.000000e+00> : vector<4x8x8xf32>
    %29 = tpu.matmul %28, %5, %cst_18 {dimension_numbers = #tpu.dot_dimension_numbers<[2], [1], [1], [2], [0, 0, 0, 1, 1, 2], [0], [0]>} : vector<4x8x8xbf16>, vector<4x8x8xbf16>, vector<4x8x8xf32> -> vector<4x8x8xf32>
    "tpu.trace_stop"() : () -> ()
    %30 = arith.truncf %29 : vector<4x8x8xf32> to vector<4x8x8xbf16>
    %c0_19 = arith.constant 0 : index
    %c0_20 = arith.constant 0 : index
    %c0_21 = arith.constant 0 : index
    %c0_22 = arith.constant 0 : index
    %31 = vector.load %arg6[%c0_19, %c0_20, %c0_21, %c0_22] : memref<1x4x8x8xbf16, #tpu.memory_space<vmem>>, vector<1x4x8x8xbf16>
    %32 = vector.shape_cast %31 : vector<1x4x8x8xbf16> to vector<4x8x8xbf16>
    %33 = vector.shape_cast %30 : vector<4x8x8xbf16> to vector<1x4x8x8xbf16>
    tpu.vector_store %arg6[%c0_19, %c0_20, %c0_21, %c0_22], %33 {strides = array<i32>} : memref<1x4x8x8xbf16, #tpu.memory_space<vmem>>, vector<1x4x8x8xbf16>,
    return
  }
  func.func @transform_0(%arg0: i32, %arg1: i32) -> (i32, i32, i32, i32) {
    %c0_i32 = arith.constant 0 : i32
    %c0_i32_0 = arith.constant 0 : i32
    %c0_i32_1 = arith.constant 0 : i32
    return %arg0, %arg1, %c0_i32, %c0_i32_0 : i32, i32, i32, i32
  }
  func.func @transform_1(%arg0: i32, %arg1: i32) -> (i32, i32, i32, i32) {
    %c0_i32 = arith.constant 0 : i32
    %c0_i32_0 = arith.constant 0 : i32
    %c0_i32_1 = arith.constant 0 : i32
    return %arg0, %arg1, %c0_i32, %c0_i32_0 : i32, i32, i32, i32
  }
  func.func @transform_2(%arg0: i32, %arg1: i32) -> (i32, i32, i32, i32) {
    %c0_i32 = arith.constant 0 : i32
    %c0_i32_0 = arith.constant 0 : i32
    %c0_i32_1 = arith.constant 0 : i32
    return %arg0, %arg1, %c0_i32, %c0_i32_0 : i32, i32, i32, i32
  }
  func.func @transform_3(%arg0: i32, %arg1: i32) -> (i32, i32, i32) {
    %c0_i32 = arith.constant 0 : i32
    %c0_i32_0 = arith.constant 0 : i32
    %c0_i32_1 = arith.constant 0 : i32
    return %arg0, %c0_i32, %c0_i32_0 : i32, i32, i32
  }
  func.func @transform_4(%arg0: i32, %arg1: i32) -> (i32, i32, i32, i32) {
    %c0_i32 = arith.constant 0 : i32
    %c0_i32_0 = arith.constant 0 : i32
    %c0_i32_1 = arith.constant 0 : i32
    return %arg0, %arg1, %c0_i32, %c0_i32_0 : i32, i32, i32, i32
  }
}

module attributes {stable_mosaic.version = 11 : i64} {
  func.func @_ln_linear_kernel(%arg0: i32, %arg1: memref<8x32xf32, #tpu.memory_space<vmem>>, %arg2: memref<1x32xf32, #tpu.memory_space<vmem>>, %arg3: memref<1x32xf32, #tpu.memory_space<vmem>>, %arg4: memref<32x64xbf16, #tpu.memory_space<vmem>>, %arg5: memref<1x64xf32, #tpu.memory_space<vmem>>, %arg6: memref<8x64xbf16, #tpu.memory_space<vmem>>) attributes {dimension_semantics = [#tpu.dimension_semantics<parallel>], iteration_bounds = array<i64: 2>, scalar_prefetch = 0 : i64, scratch_operands = 0 : i64, tpu.core_type = #tpu.core_type<tc>, window_params = [{transform_indices = @transform_0, window_bounds = array<i64: 8, 32>}, {pipeline_mode = #tpu.pipeline_mode<synchronous>, transform_indices = @transform_1, window_bounds = array<i64: 1, 32>}, {pipeline_mode = #tpu.pipeline_mode<synchronous>, transform_indices = @transform_2, window_bounds = array<i64: 1, 32>}, {pipeline_mode = #tpu.pipeline_mode<synchronous>, transform_indices = @transform_3, window_bounds = array<i64: 32, 64>}, {pipeline_mode = #tpu.pipeline_mode<synchronous>, transform_indices = @transform_4, window_bounds = array<i64: 1, 64>}, {transform_indices = @transform_5, window_bounds = array<i64: 8, 64>}]} {
    %c0 = arith.constant 0 : index
    %c0_0 = arith.constant 0 : index
    %0 = vector.load %arg1[%c0, %c0_0] : memref<8x32xf32, #tpu.memory_space<vmem>>, vector<8x32xf32>
    %cst = arith.constant dense<0.000000e+00> : vector<8xf32>
    %1 = vector.multi_reduction <add>, %0, %cst [1] : vector<8x32xf32> to vector<8xf32>
    %2 = vector.shape_cast %1 : vector<8xf32> to vector<8x1xf32>
    %cst_1 = arith.constant 3.200000e+01 : f32
    %3 = vector.broadcast %cst_1 : f32 to vector<8x1xf32>
    %4 = arith.divf %2, %3 : vector<8x1xf32>
    %5 = vector.broadcast %4 : vector<8x1xf32> to vector<8x32xf32>
    %6 = arith.subf %0, %5 : vector<8x32xf32>
    %7 = arith.mulf %6, %6 : vector<8x32xf32>
    %cst_2 = arith.constant dense<0.000000e+00> : vector<8xf32>
    %8 = vector.multi_reduction <add>, %7, %cst_2 [1] : vector<8x32xf32> to vector<8xf32>
    %9 = vector.shape_cast %8 : vector<8xf32> to vector<8x1xf32>
    %cst_3 = arith.constant 3.100000e+01 : f32
    %10 = vector.broadcast %cst_3 : f32 to vector<8x1xf32>
    %11 = arith.divf %9, %10 : vector<8x1xf32>
    %12 = math.sqrt %11 : vector<8x1xf32>
    %cst_4 = arith.constant 9.99999997E-7 : f32
    %13 = vector.broadcast %cst_4 : f32 to vector<8x1xf32>
    %14 = arith.addf %12, %13 : vector<8x1xf32>
    %15 = tpu.reciprocal %14 : vector<8x1xf32> -> vector<8x1xf32>
    %c0_5 = arith.constant 0 : index
    %c0_6 = arith.constant 0 : index
    %16 = vector.load %arg2[%c0_5, %c0_6] : memref<1x32xf32, #tpu.memory_space<vmem>>, vector<1x32xf32>
    %17 = vector.broadcast %4 : vector<8x1xf32> to vector<8x32xf32>
    %18 = arith.subf %0, %17 : vector<8x32xf32>
    %19 = vector.broadcast %16 : vector<1x32xf32> to vector<8x32xf32>
    %20 = arith.mulf %19, %18 : vector<8x32xf32>
    %21 = vector.broadcast %15 : vector<8x1xf32> to vector<8x32xf32>
    %22 = arith.mulf %20, %21 : vector<8x32xf32>
    %c0_7 = arith.constant 0 : index
    %c0_8 = arith.constant 0 : index
    %23 = vector.load %arg3[%c0_7, %c0_8] : memref<1x32xf32, #tpu.memory_space<vmem>>, vector<1x32xf32>
    %24 = vector.broadcast %23 : vector<1x32xf32> to vector<8x32xf32>
    %25 = arith.addf %22, %24 : vector<8x32xf32>
    %26 = arith.truncf %25 : vector<8x32xf32> to vector<8x32xbf16>
    %c0_9 = arith.constant 0 : index
    %c0_10 = arith.constant 0 : index
    %27 = vector.load %arg4[%c0_9, %c0_10] : memref<32x64xbf16, #tpu.memory_space<vmem>>, vector<32x64xbf16>
    %cst_11 = arith.constant dense<0.000000e+00> : vector<8x64xf32>
    %28 = tpu.matmul %26, %27, %cst_11 {dimension_numbers = #tpu.dot_dimension_numbers<[1], [0], [0], [1], [0, 0, 1, 1], [], []>} : vector<8x32xbf16>, vector<32x64xbf16>, vector<8x64xf32> -> vector<8x64xf32>
    %c0_12 = arith.constant 0 : index
    %c0_13 = arith.constant 0 : index
    %29 = vector.load %arg5[%c0_12, %c0_13] : memref<1x64xf32, #tpu.memory_space<vmem>>, vector<1x64xf32>
    %30 = vector.broadcast %29 : vector<1x64xf32> to vector<8x64xf32>
    %31 = arith.addf %28, %30 : vector<8x64xf32>
    %cst_14 = arith.constant 0.000000e+00 : f32
    %32 = vector.broadcast %cst_14 : f32 to vector<8x64xf32>
    %33 = arith.maximumf %31, %32 : vector<8x64xf32>
    %34 = arith.truncf %33 : vector<8x64xf32> to vector<8x64xbf16>
    %c0_15 = arith.constant 0 : index
    %c0_16 = arith.constant 0 : index
    %35 = vector.load %arg6[%c0_15, %c0_16] : memref<8x64xbf16, #tpu.memory_space<vmem>>, vector<8x64xbf16>
    tpu.vector_store %arg6[%c0_15, %c0_16], %34 {strides = array<i32>} : memref<8x64xbf16, #tpu.memory_space<vmem>>, vector<8x64xbf16>,
    return
  }
  func.func @transform_0(%arg0: i32) -> (i32, i32) {
    %c0_i32 = arith.constant 0 : i32
    %c0_i32_0 = arith.constant 0 : i32
    return %arg0, %c0_i32 : i32, i32
  }
  func.func @transform_1(%arg0: i32) -> (i32, i32) {
    %c0_i32 = arith.constant 0 : i32
    %c0_i32_0 = arith.constant 0 : i32
    %c0_i32_1 = arith.constant 0 : i32
    return %c0_i32, %c0_i32_0 : i32, i32
  }
  func.func @transform_2(%arg0: i32) -> (i32, i32) {
    %c0_i32 = arith.constant 0 : i32
    %c0_i32_0 = arith.constant 0 : i32
    %c0_i32_1 = arith.constant 0 : i32
    return %c0_i32, %c0_i32_0 : i32, i32
  }
  func.func @transform_3(%arg0: i32) -> (i32, i32) {
    %c0_i32 = arith.constant 0 : i32
    %c0_i32_0 = arith.constant 0 : i32
    %c0_i32_1 = arith.constant 0 : i32
    return %c0_i32, %c0_i32_0 : i32, i32
  }
  func.func @transform_4(%arg0: i32) -> (i32, i32) {
    %c0_i32 = arith.constant 0 : i32
    %c0_i32_0 = arith.constant 0 : i32
    %c0_i32_1 = arith.constant 0 : i32
    return %c0_i32, %c0_i32_0 : i32, i32
  }
  func.func @transform_5(%arg0: i32) -> (i32, i32) {
    %c0_i32 = arith.constant 0 : i32
    %c0_i32_0 = arith.constant 0 : i32
    return %arg0, %c0_i32 : i32, i32
  }
}

module attributes {stable_mosaic.version = 11 : i64} {
  func.func @_linear_kernel(%arg0: i32, %arg1: memref<8x32xf32, #tpu.memory_space<vmem>>, %arg2: memref<32x64xbf16, #tpu.memory_space<vmem>>, %arg3: memref<1x64xf32, #tpu.memory_space<vmem>>, %arg4: memref<8x64xbf16, #tpu.memory_space<vmem>>) attributes {dimension_semantics = [#tpu.dimension_semantics<parallel>], iteration_bounds = array<i64: 2>, scalar_prefetch = 0 : i64, scratch_operands = 0 : i64, tpu.core_type = #tpu.core_type<tc>, window_params = [{transform_indices = @transform_0, window_bounds = array<i64: 8, 32>}, {pipeline_mode = #tpu.pipeline_mode<synchronous>, transform_indices = @transform_1, window_bounds = array<i64: 32, 64>}, {pipeline_mode = #tpu.pipeline_mode<synchronous>, transform_indices = @transform_2, window_bounds = array<i64: 1, 64>}, {transform_indices = @transform_3, window_bounds = array<i64: 8, 64>}]} {
    %c0 = arith.constant 0 : index
    %c0_0 = arith.constant 0 : index
    %0 = vector.load %arg1[%c0, %c0_0] : memref<8x32xf32, #tpu.memory_space<vmem>>, vector<8x32xf32>
    %1 = arith.truncf %0 : vector<8x32xf32> to vector<8x32xbf16>
    %c0_1 = arith.constant 0 : index
    %c0_2 = arith.constant 0 : index
    %2 = vector.load %arg2[%c0_1, %c0_2] : memref<32x64xbf16, #tpu.memory_space<vmem>>, vector<32x64xbf16>
    %cst = arith.constant dense<0.000000e+00> : vector<8x64xf32>
    %3 = tpu.matmul %1, %2, %cst {dimension_numbers = #tpu.dot_dimension_numbers<[1], [0], [0], [1], [0, 0, 1, 1], [], []>} : vector<8x32xbf16>, vector<32x64xbf16>, vector<8x64xf32> -> vector<8x64xf32>
    %c0_3 = arith.constant 0 : index
    %c0_4 = arith.constant 0 : index
    %4 = vector.load %arg3[%c0_3, %c0_4] : memref<1x64xf32, #tpu.memory_space<vmem>>, vector<1x64xf32>
    %5 = vector.broadcast %4 : vector<1x64xf32> to vector<8x64xf32>
    %6 = arith.addf %3, %5 : vector<8x64xf32>
    %7 = arith.truncf %6 : vector<8x64xf32> to vector<8x64xbf16>
    %c0_5 = arith.constant 0 : index
    %c0_6 = arith.constant 0 : index
    %8 = vector.load %arg4[%c0_5, %c0_6] : memref<8x64xbf16, #tpu.memory_space<vmem>>, vector<8x64xbf16>
    tpu.vector_store %arg4[%c0_5, %c0_6], %7 {strides = array<i32>} : memref<8x64xbf16, #tpu.memory_space<vmem>>, vector<8x64xbf16>,
    return
  }
  func.func @transform_0(%arg0: i32) -> (i32, i32) {
    %c0_i32 = arith.constant 0 : i32
    %c0_i32_0 = arith.constant 0 : i32
    return %arg0, %c0_i32 : i32, i32
  }
  func.func @transform_1(%arg0: i32) -> (i32, i32) {
    %c0_i32 = arith.constant 0 : i32
    %c0_i32_0 = arith.constant 0 : i32
    %c0_i32_1 = arith.constant 0 : i32
    return %c0_i32, %c0_i32_0 : i32, i32
  }
  func.func @transform_2(%arg0: i32) -> (i32, i32) {
    %c0_i32 = arith.constant 0 : i32
    %c0_i32_0 = arith.constant 0 : i32
    %c0_i32_1 = arith.constant 0 : i32
    return %c0_i32, %c0_i32_0 : i32, i32
  }
  func.func @transform_3(%arg0: i32) -> (i32, i32) {
    %c0_i32 = arith.constant 0 : i32
    %c0_i32_0 = arith.constant 0 : i32
    return %arg0, %c0_i32 : i32, i32
  }
}

module attributes {stable_mosaic.version = 11 : i64} {
  func.func @_layernorm_kernel(%arg0: i32, %arg1: memref<8x32xf32, #tpu.memory_space<vmem>>, %arg2: memref<1x32xf32, #tpu.memory_space<vmem>>, %arg3: memref<1x32xf32, #tpu.memory_space<vmem>>, %arg4: memref<8x32xf32, #tpu.memory_space<vmem>>) attributes {dimension_semantics = [#tpu.dimension_semantics<parallel>], iteration_bounds = array<i64: 2>, scalar_prefetch = 0 : i64, scratch_operands = 0 : i64, tpu.core_type = #tpu.core_type<tc>, window_params = [{transform_indices = @transform_0, window_bounds = array<i64: 8, 32>}, {pipeline_mode = #tpu.pipeline_mode<synchronous>, transform_indices = @transform_1, window_bounds = array<i64: 1, 32>}, {pipeline_mode = #tpu.pipeline_mode<synchronous>, transform_indices = @transform_2, window_bounds = array<i64: 1, 32>}, {transform_indices = @transform_3, window_bounds = array<i64: 8, 32>}]} {
    %c0 = arith.constant 0 : index
    %c0_0 = arith.constant 0 : index
    %0 = vector.load %arg1[%c0, %c0_0] : memref<8x32xf32, #tpu.memory_space<vmem>>, vector<8x32xf32>
    %cst = arith.constant dense<0.000000e+00> : vector<8xf32>
    %1 = vector.multi_reduction <add>, %0, %cst [1] : vector<8x32xf32> to vector<8xf32>
    %2 = vector.shape_cast %1 : vector<8xf32> to vector<8x1xf32>
    %cst_1 = arith.constant 3.200000e+01 : f32
    %3 = vector.broadcast %cst_1 : f32 to vector<8x1xf32>
    %4 = arith.divf %2, %3 : vector<8x1xf32>
    %5 = vector.broadcast %4 : vector<8x1xf32> to vector<8x32xf32>
    %6 = arith.subf %0, %5 : vector<8x32xf32>
    %7 = arith.mulf %6, %6 : vector<8x32xf32>
    %cst_2 = arith.constant dense<0.000000e+00> : vector<8xf32>
    %8 = vector.multi_reduction <add>, %7, %cst_2 [1] : vector<8x32xf32> to vector<8xf32>
    %9 = vector.shape_cast %8 : vector<8xf32> to vector<8x1xf32>
    %cst_3 = arith.constant 3.100000e+01 : f32
    %10 = vector.broadcast %cst_3 : f32 to vector<8x1xf32>
    %11 = arith.divf %9, %10 : vector<8x1xf32>
    %12 = math.sqrt %11 : vector<8x1xf32>
    %cst_4 = arith.constant 9.99999997E-7 : f32
    %13 = vector.broadcast %cst_4 : f32 to vector<8x1xf32>
    %14 = arith.addf %12, %13 : vector<8x1xf32>
    %15 = tpu.reciprocal %14 : vector<8x1xf32> -> vector<8x1xf32>
    %c0_5 = arith.constant 0 : index
    %c0_6 = arith.constant 0 : index
    %16 = vector.load %arg2[%c0_5, %c0_6] : memref<1x32xf32, #tpu.memory_space<vmem>>, vector<1x32xf32>
    %17 = vector.broadcast %4 : vector<8x1xf32> to vector<8x32xf32>
    %18 = arith.subf %0, %17 : vector<8x32xf32>
    %19 = vector.broadcast %16 : vector<1x32xf32> to vector<8x32xf32>
    %20 = arith.mulf %19, %18 : vector<8x32xf32>
    %21 = vector.broadcast %15 : vector<8x1xf32> to vector<8x32xf32>
    %22 = arith.mulf %20, %21 : vector<8x32xf32>
    %c0_7 = arith.constant 0 : index
    %c0_8 = arith.constant 0 : index
    %23 = vector.load %arg3[%c0_7, %c0_8] : memref<1x32xf32, #tpu.memory_space<vmem>>, vector<1x32xf32>
    %24 = vector.broadcast %23 : vector<1x32xf32> to vector<8x32xf32>
    %25 = arith.addf %22, %24 : vector<8x32xf32>
    %c0_9 = arith.constant 0 : index
    %c0_10 = arith.constant 0 : index
    %26 = vector.load %arg4[%c0_9, %c0_10] : memref<8x32xf32, #tpu.memory_space<vmem>>, vector<8x32xf32>
    tpu.vector_store %arg4[%c0_9, %c0_10], %25 {strides = array<i32>} : memref<8x32xf32, #tpu.memory_space<vmem>>, vector<8x32xf32>,
    return
  }
  func.func @transform_0(%arg0: i32) -> (i32, i32) {
    %c0_i32 = arith.constant 0 : i32
    %c0_i32_0 = arith.constant 0 : i32
    return %arg0, %c0_i32 : i32, i32
  }
  func.func @transform_1(%arg0: i32) -> (i32, i32) {
    %c0_i32 = arith.constant 0 : i32
    %c0_i32_0 = arith.constant 0 : i32
    %c0_i32_1 = arith.constant 0 : i32
    return %c0_i32, %c0_i32_0 : i32, i32
  }
  func.func @transform_2(%arg0: i32) -> (i32, i32) {
    %c0_i32 = arith.constant 0 : i32
    %c0_i32_0 = arith.constant 0 : i32
    %c0_i32_1 = arith.constant 0 : i32
    return %c0_i32, %c0_i32_0 : i32, i32
  }
  func.func @transform_3(%arg0: i32) -> (i32, i32) {
    %c0_i32 = arith.constant 0 : i32
    %c0_i32_0 = arith.constant 0 : i32
    return %arg0, %c0_i32 : i32, i32
  }
}

module attributes {stable_mosaic.version = 11 : i64} {
  func.func @_layernorm_kernel(%arg0: i32, %arg1: memref<8x32xf32, #tpu.memory_space<vmem>>, %arg2: memref<1x32xf32, #tpu.memory_space<vmem>>, %arg3: memref<1x32xf32, #tpu.memory_space<vmem>>, %arg4: memref<8x32xf32, #tpu.memory_space<vmem>>) attributes {dimension_semantics = [#tpu.dimension_semantics<parallel>], iteration_bounds = array<i64: 2>, scalar_prefetch = 0 : i64, scratch_operands = 0 : i64, tpu.core_type = #tpu.core_type<tc>, window_params = [{transform_indices = @transform_0, window_bounds = array<i64: 8, 32>}, {pipeline_mode = #tpu.pipeline_mode<synchronous>, transform_indices = @transform_1, window_bounds = array<i64: 1, 32>}, {pipeline_mode = #tpu.pipeline_mode<synchronous>, transform_indices = @transform_2, window_bounds = array<i64: 1, 32>}, {transform_indices = @transform_3, window_bounds = array<i64: 8, 32>}]} {
    %c0 = arith.constant 0 : index
    %c0_0 = arith.constant 0 : index
    %0 = vector.load %arg1[%c0, %c0_0] : memref<8x32xf32, #tpu.memory_space<vmem>>, vector<8x32xf32>
    %cst = arith.constant dense<0.000000e+00> : vector<8xf32>
    %1 = vector.multi_reduction <add>, %0, %cst [1] : vector<8x32xf32> to vector<8xf32>
    %2 = vector.shape_cast %1 : vector<8xf32> to vector<8x1xf32>
    %cst_1 = arith.constant 3.200000e+01 : f32
    %3 = vector.broadcast %cst_1 : f32 to vector<8x1xf32>
    %4 = arith.divf %2, %3 : vector<8x1xf32>
    %5 = vector.broadcast %4 : vector<8x1xf32> to vector<8x32xf32>
    %6 = arith.subf %0, %5 : vector<8x32xf32>
    %7 = arith.mulf %6, %6 : vector<8x32xf32>
    %cst_2 = arith.constant dense<0.000000e+00> : vector<8xf32>
    %8 = vector.multi_reduction <add>, %7, %cst_2 [1] : vector<8x32xf32> to vector<8xf32>
    %9 = vector.shape_cast %8 : vector<8xf32> to vector<8x1xf32>
    %cst_3 = arith.constant 3.100000e+01 : f32
    %10 = vector.broadcast %cst_3 : f32 to vector<8x1xf32>
    %11 = arith.divf %9, %10 : vector<8x1xf32>
    %12 = math.sqrt %11 : vector<8x1xf32>
    %cst_4 = arith.constant 9.99999997E-7 : f32
    %13 = vector.broadcast %cst_4 : f32 to vector<8x1xf32>
    %14 = arith.addf %12, %13 : vector<8x1xf32>
    %15 = tpu.reciprocal %14 : vector<8x1xf32> -> vector<8x1xf32>
    %c0_5 = arith.constant 0 : index
    %c0_6 = arith.constant 0 : index
    %16 = vector.load %arg2[%c0_5, %c0_6] : memref<1x32xf32, #tpu.memory_space<vmem>>, vector<1x32xf32>
    %17 = vector.broadcast %4 : vector<8x1xf32> to vector<8x32xf32>
    %18 = arith.subf %0, %17 : vector<8x32xf32>
    %19 = vector.broadcast %16 : vector<1x32xf32> to vector<8x32xf32>
    %20 = arith.mulf %19, %18 : vector<8x32xf32>
    %21 = vector.broadcast %15 : vector<8x1xf32> to vector<8x32xf32>
    %22 = arith.mulf %20, %21 : vector<8x32xf32>
    %c0_7 = arith.constant 0 : index
    %c0_8 = arith.constant 0 : index
    %23 = vector.load %arg3[%c0_7, %c0_8] : memref<1x32xf32, #tpu.memory_space<vmem>>, vector<1x32xf32>
    %24 = vector.broadcast %23 : vector<1x32xf32> to vector<8x32xf32>
    %25 = arith.addf %22, %24 : vector<8x32xf32>
    %c0_9 = arith.constant 0 : index
    %c0_10 = arith.constant 0 : index
    %26 = vector.load %arg4[%c0_9, %c0_10] : memref<8x32xf32, #tpu.memory_space<vmem>>, vector<8x32xf32>
    tpu.vector_store %arg4[%c0_9, %c0_10], %25 {strides = array<i32>} : memref<8x32xf32, #tpu.memory_space<vmem>>, vector<8x32xf32>,
    return
  }
  func.func @transform_0(%arg0: i32) -> (i32, i32) {
    %c0_i32 = arith.constant 0 : i32
    %c0_i32_0 = arith.constant 0 : i32
    return %arg0, %c0_i32 : i32, i32
  }
  func.func @transform_1(%arg0: i32) -> (i32, i32) {
    %c0_i32 = arith.constant 0 : i32
    %c0_i32_0 = arith.constant 0 : i32
    %c0_i32_1 = arith.constant 0 : i32
    return %c0_i32, %c0_i32_0 : i32, i32
  }
  func.func @transform_2(%arg0: i32) -> (i32, i32) {
    %c0_i32 = arith.constant 0 : i32
    %c0_i32_0 = arith.constant 0 : i32
    %c0_i32_1 = arith.constant 0 : i32
    return %c0_i32, %c0_i32_0 : i32, i32
  }
  func.func @transform_3(%arg0: i32) -> (i32, i32) {
    %c0_i32 = arith.constant 0 : i32
    %c0_i32_0 = arith.constant 0 : i32
    return %arg0, %c0_i32 : i32, i32
  }
}

</mosaic_0001>

<bundles_post_ra>
// kernel: encoder_decoder_forward.42
= control target key start
LH: loop header
LB: loop body
LE: loop exit
PB: predicated region body
PF: predicated region fallthrough
CT: control target
= control target key end

     0   :  { %s1098_s15 = smov 0   ;;  %s1100_s16 = smov 0   ;;  %s1202_s0 = inlined_call_operand.vmem [shape: bf16[2,4,8,8], index: 0, kind: input, shape index: {}]   ;;  %s1203_s1 = inlined_call_operand.vmem [shape: bf16[2,4,8,8], index: 1, kind: input, shape index: {}]   ;;  %s1204_s2 = inlined_call_operand.vmem [shape: bf16[2,4,8,8], index: 2, kind: input, shape index: {}]   ;;  %s1205_s3 = inlined_call_operand.vmem [shape: s32[2,8,8], index: 3, kind: input, shape index: {}]   ;;  %s1206_s4 = inlined_call_operand.vmem [shape: bf16[2,4,8,8], index: 4, kind: output, shape index: {}]  }
   0x1   :  { %s1102_s17 = smov 0  }
   0x2 LB: > { %s26_s18 = sadd.s32 1, %s1065_s16  ;;  %p917_p0 = scmp.ge.s32.totalorder %s1069_s17, 1  ;;  %s1069_s17 = sphi %s1102_s17, %s14_s17   ;;  %s1065_s16 = sphi %s1100_s16, %s1208_s16   ;;  %s1061_s15 = sphi %s1098_s15, %s1207_s15  }
   0x3   : > { %p28_p1 = scmp.ge.s32.totalorder %s26_s18, 2  ;;  %p226_p2 = scmp.lt.s32.totalorder %s1069_s17, 3 }
   0x5   : > { %s1210_s18 = smov (%p28_p1, %s26_s18), 0  ;;  %p227_p3 = pnand %p917_p0, %p226_p2 }
   0x6   : > { %p283_p4 = scmp.lt.s32.totalorder (!%p227_p3), %s1061_s15, 1  ;;  %v1071_v0 = vmov (!%p227_p3), 0.0   ;;  %vm1072_vm0 = vmmov (!%p227_p3), 0   ;;  %vm340_vm1 = vcmask (!%p227_p3), 64512   ;;  %vm587_vm3 = vcmask (!%p227_p3), 1043456  }
   0x7   : > { %230 = sbr.rel (%p227_p3) target bundleno = 784 (0x310), region = 36  ;;  %957 = vmatprep.subr.bf16.mxu0 (!%p227_p3), %v1071_v0  ;;  %963 = vmatprep.subr.bf16.mxu1 (!%p227_p3), %v1071_v0  ;;  %vm773_vm4 = vcmask (!%p227_p3), 60416  }
   0x8   : > { %959 = vmatprep.mubr.msk.bf16.mxu0 (!%p227_p3), %vm1072_vm0, %v1071_v0  ;;  %965 = vmatprep.mubr.msk.bf16.mxu1 (!%p227_p3), %vm1072_vm0, %v1071_v0 }
   0xe   : > { %s1212_s15 = smov (!%p283_p4, %s1061_s15), 1 }
   0xf   : > { %s1125_s19 = sshll.u32 %s1212_s15, 4  ;;  %s924_s26 = sshll.u32 %s1212_s15, 3 }
  0x10   : > { %s300_s22 = scalar_lea.vmem %s1203_s1, %s1125_s19  ;;  %s290_s25 = scalar_lea.vmem %s1202_s0, %s1125_s19 }
  0x11   : > { %v331_v1 = vld [vmem:[%s300_s22] sm:$0xf]  ;;  %v332_v2 = vld [vmem:[%s300_s22 + $0x4] sm:$0xf]  ;;  %v333_v5 = vld [vmem:[%s300_s22 + $0x8] sm:$0xf]  ;;  %s315_s29 = scalar_lea.vmem %s1205_s3, %s924_s26  ;;  %s310_s6 = scalar_lea.vmem %s1204_s2, %s1125_s19 }
  0x12   : > { %v345_v3 = vsel %vm340_vm1, %v331_v1, 0  ;;  %v391_v4 = vsel %vm340_vm1, %v332_v2, 0  ;;  %v334_v6 = vld [vmem:[%s300_s22 + $0xc] sm:$0xf]  ;;  %v327_v7 = vld [vmem:[%s290_s25] sm:$0xf]  ;;  %s324_s9 = scalar_lea.vmem %s1206_s4, %s1125_s19 }
  0x13   : > { %958 = vmatpush3.bf16.xpose.msra.mxu0 %v345_v3  ;;  %964 = vmatpush3.bf16.xpose.msra.mxu1 %v391_v4  ;;  %v328_v8 = vld [vmem:[%s290_s25 + $0x4] sm:$0xf]  ;;  %v437_v9 = vsel %vm340_vm1, %v333_v5, 0  ;;  %v483_v10 = vsel %vm340_vm1, %v334_v6, 0  ;;  %v329_v11 = vld [vmem:[%s290_s25 + $0x8] sm:$0xf] }
  0x14   : > { %969 = vmatprep.subr.bf16.mxu0 %v1071_v0  ;;  %975 = vmatprep.subr.bf16.mxu1 %v1071_v0  ;;  %v330_v12 = vld [vmem:[%s290_s25 + $0xc] sm:$0xf]  ;;  %v339_v13 = vld [vmem:[%s315_s29] sm:$0xff]  ;;  %v337_v3 = vld [vmem:[%s310_s6 + $0x8] sm:$0xf] }
  0x15   : > { %vm529_vm2 = vcmp.eq.s32.totalorder %v339_v13, 0  ;;  %v335_v62 = vld [vmem:[%s310_s6] sm:$0xf]  ;;  %v336_v1 = vld [vmem:[%s310_s6 + $0x4] sm:$0xf]  ;;  %v681_v4 = vsel %vm587_vm3, %v337_v3, 0 }
  0x16   : > { %v589_v63 = vsel %vm587_vm3, %v335_v62, 0  ;;  %v635_v2 = vsel %vm587_vm3, %v336_v1, 0  ;;  %v338_v5 = vld [vmem:[%s310_s6 + $0xc] sm:$0xf] }
  0x17   : > { %v727_v6 = vsel %vm587_vm3, %v338_v5, 0 }
  0x1a   : > { %960 = vmatmul.mubr.msk.bf16.vlgmr.msra.gmra.mrb[0].mxu0 %vm340_vm1, %v327_v7  ;;  %966 = vmatmul.mubr.msk.bf16.vlgmr.msra.gmra.mrb[0].mxu1 %vm340_vm1, %v328_v8 }
  0x1b   : > { %970 = vmatpush3.bf16.xpose.msra.mxu0 %v437_v9  ;;  %976 = vmatpush3.bf16.xpose.msra.mxu1 %v483_v10 }
  0x1c   : > { %971 = vmatprep.mubr.msk.bf16.mxu0 %vm1072_vm0, %v1071_v0  ;;  %977 = vmatprep.mubr.msk.bf16.mxu1 %vm1072_vm0, %v1071_v0 }
  0x1d   : > { %981 = vmatprep.subr.bf16.mxu0 %v1071_v0  ;;  %987 = vmatprep.subr.bf16.mxu1 %v1071_v0 }
  0x22   : > { %972 = vmatmul.mubr.msk.bf16.vlgmr.msra.gmra.mrb[4].mxu0 %vm340_vm1, %v329_v11  ;;  %978 = vmatmul.mubr.msk.bf16.vlgmr.msra.gmra.mrb[4].mxu1 %vm340_vm1, %v330_v12 }
  0x23   : > { %983 = vmatprep.mubr.msk.bf16.mxu0 %vm1072_vm0, %v1071_v0  ;;  %989 = vmatprep.mubr.msk.bf16.mxu1 %vm1072_vm0, %v1071_v0 }
  0x24   : > { %982 = vmatpush3.bf16.msra.mxu0 %v589_v63  ;;  %988 = vmatpush3.bf16.msra.mxu1 %v635_v2 }
  0x25   : > { %993 = vmatprep.subr.bf16.mxu0 %v1071_v0  ;;  %999 = vmatprep.subr.bf16.mxu1 %v1071_v0 }
  0xed   : > { %v381_v14 = vpop.f32.mrb[0].mxu0  ;;  %v427_v15 = vpop.f32.mrb[0].mxu1 }
  0xee   : > { %v525_v16 = vmul.f32 0.35355338, %v381_v14  ;;  %v961_v17 = vpop.f32.mrb[1].mxu0  ;;  %v526_v18 = vmul.f32 0.35355338, %v427_v15  ;;  %v967_v19 = vpop.f32.mrb[1].mxu1 }
  0xef   : > { %v384_v20 = vpop.f32.mrb[2].mxu0  ;;  %v430_v21 = vpop.f32.mrb[2].mxu1 }
  0xf0   : > { %v962_v22 = vpop.f32.mrb[3].mxu0  ;;  %v968_v23 = vpop.f32.mrb[3].mxu1  ;;  %v532_v24 = vsel %vm529_vm2, -1e+09, %v525_v16  ;;  %v533_v25 = vsel %vm529_vm2, -1e+09, %v526_v18 }
  0xf1   : > { %v536_v26 = vsel %vm340_vm1, %v532_v24, -inf  ;;  %v539_v27 = vsel %vm340_vm1, %v533_v25, -inf }
  0xf2   : > { %537 = vmax.xlane.f32.xlu0 %v536_v26 }
  0xf5   : > { %v473_v28 = vpop.f32.mrb[4].mxu0  ;;  %v519_v29 = vpop.f32.mrb[4].mxu1 }
  0xf6   : > { %v527_v30 = vmul.f32 0.35355338, %v473_v28  ;;  %540 = vmax.xlane.f32.xlu0 %v539_v27  ;;  %v973_v31 = vpop.f32.mrb[5].mxu0  ;;  %v528_v32 = vmul.f32 0.35355338, %v519_v29  ;;  %v979_v33 = vpop.f32.mrb[5].mxu1 }
  0xf7   : > { %v476_v34 = vpop.f32.mrb[6].mxu0  ;;  %v522_v35 = vpop.f32.mrb[6].mxu1 }
  0xf8   : > { %v974_v36 = vpop.f32.mrb[7].mxu0  ;;  %v980_v37 = vpop.f32.mrb[7].mxu1  ;;  %v534_v38 = vsel %vm529_vm2, -1e+09, %v527_v30  ;;  %v535_v39 = vsel %vm529_vm2, -1e+09, %v528_v32 }
  0xf9   : > { %v542_v40 = vsel %vm340_vm1, %v534_v38, -inf  ;;  %v545_v41 = vsel %vm340_vm1, %v535_v39, -inf }
  0xfa   : > { %543 = vmax.xlane.f32.xlu1 %v542_v40 }
  0xfe   : > { %546 = vmax.xlane.f32.xlu1 %v545_v41 }
 0x17f   : > { %v538_v42 = vpop.xlane.xlu0 %537 }
 0x180   : > { %v548_v43 = vsub.f32 %v532_v24, %v538_v42 }
 0x182   : > { %v552_v44 = vmul.f32 1.442695, %v548_v43 }
 0x183   : > { %v541_v45 = vpop.xlane.xlu0 %540 }
 0x184   : > { %1031 = vpow2.f32 %v552_v44  ;;  %v549_v46 = vsub.f32 %v533_v25, %v541_v45 }
 0x186   : > { %v554_v47 = vmul.f32 1.442695, %v549_v46 }
 0x187   : > { %v544_v48 = vpop.xlane.xlu1 %543 }
 0x188   : > { %1033 = vpow2.f32 %v554_v47  ;;  %v550_v49 = vsub.f32 %v534_v38, %v544_v48 }
 0x18a   : > { %v556_v50 = vmul.f32 1.442695, %v550_v49 }
 0x18b   : > { %v547_v51 = vpop.xlane.xlu1 %546 }
 0x18c   : > { %1035 = vpow2.f32 %v556_v50  ;;  %v551_v52 = vsub.f32 %v535_v39, %v547_v51 }
 0x18e   : > { %v1032_v53 = vpop.eup %1031  ;;  %v558_v54 = vmul.f32 1.442695, %v551_v52 }
 0x18f   : > { %v560_v55 = vsel %vm340_vm1, %v1032_v53, 0.0 }
 0x190   : > { %1037 = vpow2.f32 %v558_v54  ;;  %561 = vadd.xlane.f32.xlu0 %v560_v55 }
 0x192   : > { %v1034_v56 = vpop.eup %1033 }
 0x193   : > { %v563_v57 = vsel %vm340_vm1, %v1034_v56, 0.0 }
 0x194   : > { %564 = vadd.xlane.f32.xlu1 %v563_v57 }
 0x196   : > { %v1036_v58 = vpop.eup %1035 }
 0x197   : > { %v566_v59 = vsel %vm340_vm1, %v1036_v58, 0.0 }
 0x198   : > { %567 = vadd.xlane.f32.xlu0 %v566_v59 }
 0x19a   : > { %v1038_v60 = vpop.eup %1037 }
 0x19b   : > { %v569_v61 = vsel %vm340_vm1, %v1038_v60, 0.0 }
 0x19c   : > { %570 = vadd.xlane.f32.xlu1 %v569_v61 }
 0x21d   : > { %v562_v7 = vpop.xlane.xlu0 %561 }
 0x21e   : > { %1039 = vrcp.f32 %v562_v7 }
 0x221   : > { %v565_v8 = vpop.xlane.xlu1 %564 }
 0x222   : > { %1041 = vrcp.f32 %v565_v8 }
 0x225   : > { %v568_v9 = vpop.xlane.xlu0 %567 }
 0x226   : > { %1043 = vrcp.f32 %v568_v9 }
 0x228   : > { %v1040_v10 = vpop.eup %1039 }
 0x229   : > { %v576_v11 = vmul.f32 %v1040_v10, %v1032_v53  ;;  %v571_v12 = vpop.xlane.xlu1 %570 }
 0x22a   : > { %1045 = vrcp.f32 %v571_v12 }
 0x22b   : > { %v580_v13 = vpack.c.bf16 %v576_v11, %v576_v11 }
 0x22c   : > { %v1042_v14 = vpop.eup %1041 }
 0x22d   : > { %v577_v15 = vmul.f32 %v1042_v14, %v1034_v56  ;;  %984 = vmatmul.mubr.msk.bf16.vlgmr.msra.gmra.mrb[8].mxu0 %vm340_vm1, %v580_v13 }
 0x22e   : > { %994 = vmatpush3.bf16.msra.mxu0 %v681_v4  ;;  %995 = vmatprep.mubr.msk.bf16.mxu0 %vm1072_vm0, %v1071_v0 }
 0x22f   : > { %v581_v16 = vpack.c.bf16 %v577_v15, %v577_v15 }
 0x230   : > { %v1044_v17 = vpop.eup %1043 }
 0x231   : > { %v578_v18 = vmul.f32 %v1044_v17, %v1036_v58  ;;  %990 = vmatmul.mubr.msk.bf16.vlgmr.msra.gmra.mrb[8].mxu1 %vm340_vm1, %v581_v16 }
 0x232   : > { %1000 = vmatpush3.bf16.msra.mxu1 %v727_v6  ;;  %1001 = vmatprep.mubr.msk.bf16.mxu1 %vm1072_vm0, %v1071_v0 }
 0x233   : > { %v582_v19 = vpack.c.bf16 %v578_v18, %v578_v18 }
 0x234   : > { %v1046_v20 = vpop.eup %1045 }
 0x235   : > { %v579_v21 = vmul.f32 %v1046_v20, %v1038_v60  ;;  %996 = vmatmul.mubr.msk.bf16.vlgmr.msra.gmra.mrb[12].mxu0 %vm340_vm1, %v582_v19 }
 0x237   : > { %v583_v22 = vpack.c.bf16 %v579_v21, %v579_v21 }
 0x239   : > { %1002 = vmatmul.mubr.msk.bf16.vlgmr.msra.gmra.mrb[12].mxu1 %vm340_vm1, %v583_v22 }
 0x300   : > { %v625_v23 = vpop.f32.mrb[8].mxu0 }
 0x301   : > { %v769_v24 = vpack.c.bf16 %v625_v23, %v625_v23  ;;  %v985_v25 = vpop.f32.mrb[9].mxu0 }
 0x302   : > { %v628_v26 = vpop.f32.mrb[10].mxu0 }
 0x303   : > { %774 = vst.msk [vmem:[%s324_s9] sm:$0xf] %vm773_vm4, %v769_v24  ;;  %v986_v0 = vpop.f32.mrb[11].mxu0 }
 0x304   : > { %v671_v27 = vpop.f32.mrb[8].mxu1 }
 0x305   : > { %v770_v28 = vpack.c.bf16 %v671_v27, %v671_v27  ;;  %v991_v29 = vpop.f32.mrb[9].mxu1 }
 0x306   : > { %v674_v30 = vpop.f32.mrb[10].mxu1 }
 0x307   : > { %775 = vst.msk [vmem:[%s324_s9 + $0x4] sm:$0xf] %vm773_vm4, %v770_v28  ;;  %v992_v31 = vpop.f32.mrb[11].mxu1 }
 0x308   : > { %v717_v32 = vpop.f32.mrb[12].mxu0 }
 0x309   : > { %v771_v33 = vpack.c.bf16 %v717_v32, %v717_v32  ;;  %v997_v34 = vpop.f32.mrb[13].mxu0 }
 0x30a   : > { %v720_v35 = vpop.f32.mrb[14].mxu0 }
 0x30b   : > { %776 = vst.msk [vmem:[%s324_s9 + $0x8] sm:$0xf] %vm773_vm4, %v771_v33  ;;  %v998_v36 = vpop.f32.mrb[15].mxu0 }
 0x30c   : > { %v763_v37 = vpop.f32.mrb[12].mxu1 }
 0x30d   : > { %v772_v38 = vpack.c.bf16 %v763_v37, %v763_v37  ;;  %v1003_v39 = vpop.f32.mrb[13].mxu1 }
 0x30e   : > { %v766_v40 = vpop.f32.mrb[14].mxu1 }
 0x30f   : > { %777 = vst.msk [vmem:[%s324_s9 + $0xc] sm:$0xf] %vm773_vm4, %v772_v38  ;;  %v1004_v41 = vpop.f32.mrb[15].mxu1 }
 0x310 PF: > { %s14_s17 = sadd.s32 1, %s1069_s17   ;;  %s1207_s15 = smov %s1065_s16 }
 0x311   : > { %p11_p5 = scmp.ge.s32.totalorder %s14_s17, 4   ;;  %s1208_s16 = smov %s1210_s18 }
 0x313   :  { %13 = sbr.rel (!%p11_p5) target bundleno = 2 (0x2), region = 75 }

// kernel: encoder_decoder_forward.41
= control target key start
LH: loop header
LB: loop body
LE: loop exit
PB: predicated region body
PF: predicated region fallthrough
CT: control target
= control target key end

     0   :  { %s466_s18 = smov 0   ;;  %s505_s0 = inlined_call_operand.vmem [shape: f32[16,32], index: 0, kind: input, shape index: {}]   ;;  %s506_s1 = inlined_call_operand.vmem [shape: f32[1,32], index: 1, kind: input, shape index: {}]   ;;  %s507_s2 = inlined_call_operand.vmem [shape: f32[1,32], index: 2, kind: input, shape index: {}]   ;;  %s508_s3 = inlined_call_operand.vmem [shape: bf16[32,96], index: 3, kind: input, shape index: {}]   ;;  %s509_s4 = inlined_call_operand.vmem [shape: f32[1,96], index: 4, kind: input, shape index: {}]   ;;  %s510_s5 = inlined_call_operand.vmem [shape: bf16[16,96], index: 5, kind: output, shape index: {}]  }
   0x1 LB: > { %s384_s19 = sadd.s32 4294967295, %s432_s18   ;;  %p388_p0 = scmp.ge.s32.totalorder %s432_s18, 1  ;;  %s432_s18 = sphi %s466_s18, %s15_s18  }
   0x2   : > { %p186_p1 = scmp.lt.s32.totalorder %s432_s18, 3 }
   0x4   : > { %p187_p2 = pnand %p388_p0, %p186_p1 }
   0x5   : > { %p212_p3 = scmp.lt.s32.totalorder (!%p187_p2), %s384_s19, 1  ;;  %vm222_vm0 = vcmask (!%p187_p2), 261120   ;;  %v420_v7 = vld [vmem:[%s508_s3] sm:$0xff] (!%p187_p2)   ;;  %v434_v8 = vmov (!%p187_p2), 0.0   ;;  %vm435_vm1 = vmmov (!%p187_p2), 0   ;;  %v421_v9 = vld [vmem:[%s508_s3 + $0x8] sm:$0xff] (!%p187_p2)  }
   0x6   : > { %190 = sbr.rel (%p187_p2) target bundleno = 562 (0x232), region = 40  ;;  %402 = vmatprep.subr.bf16.mxu0 (!%p187_p2), %v434_v8  ;;  %406 = vmatprep.mubr.msk.bf16.mxu0 (!%p187_p2), %vm435_vm1, %v434_v8  ;;  %v391_v18 = vld [vmem:[%s506_s1] ss:$0 sm:$0xff] (!%p187_p2)  ;;  %vm329_vm4 = vcmask (!%p187_p2), 781312  }
   0x7   : > { %403 = vmatpush3.bf16.msra.mxu0 (!%p187_p2), %v420_v7  ;;  %v392_v21 = vld [vmem:[%s507_s2] ss:$0 sm:$0xff] (!%p187_p2) }
   0x8   : > { %404 = vmatprep.subr.bf16.mxu0 (!%p187_p2), %v434_v8  ;;  %v393_v25 = vld [vmem:[%s509_s4] ss:$0 sm:$0xff] (!%p187_p2) }
   0xb   : > { %405 = vmatpush3.bf16.msra.mxu0 (!%p187_p2), %v421_v9 }
   0xd   : > { %s512_s19 = smov (!%p212_p3, %s384_s19), 1 }
   0xe   : > { %s389_s20 = sshll.u32 %s512_s19, 3  ;;  %s390_s9 = sshll.u32 %s512_s19, 2 }
   0xf   : > { %s215_s23 = scalar_lea.vmem %s505_s0, %s389_s20  ;;  %s219_s12 = scalar_lea.vmem %s510_s5, %s390_s9 }
  0x10   : > { %v221_v0 = vld [vmem:[%s215_s23] sm:$0xff] }
  0x11   : > { %v223_v1 = vsel %vm222_vm0, %v221_v0, 0.0 }
  0x12   : > { %224 = vadd.xlane.f32.xlu0 %v223_v1 }
  0x9f   : > { %v225_v2 = vpop.xlane.xlu0 %224 }
  0xa0   : > { %v227_v3 = vmul.f32 0.03125, %v225_v2 }
  0xa2   : > { %v228_v4 = vsub.f32 %v221_v0, %v227_v3 }
  0xa4   : > { %v229_v5 = vmul.f32 %v228_v4, %v228_v4  ;;  %v251_v19 = vmul.f32 %v391_v18, %v228_v4 }
  0xa6   : > { %v230_v6 = vsel %vm222_vm0, %v229_v5, 0.0 }
  0xa7   : > { %231 = vadd.xlane.f32.xlu0 %v230_v6 }
 0x134   : > { %v232_v10 = vpop.xlane.xlu0 %231 }
 0x135   : > { %v234_v11 = vmul.f32 0.032258064, %v232_v10 }
 0x137   : > { %422 = vrsqrt.f32 %v234_v11  ;;  %vm237_vm2 = vcmp.eq.f32.partialorder %v234_v11, inf  ;;  %v240_v14 = vand.u32 2147483648, %v234_v11  ;;  %vm239_vm3 = vcmp.eq.f32.partialorder %v234_v11, 0.0 }
 0x141   : > { %v423_v12 = vpop.eup %422 }
 0x142   : > { %v236_v13 = vmul.f32 %v423_v12, %v234_v11 }
 0x144   : > { %v238_v15 = vsel %vm237_vm2, %v234_v11, %v236_v13 }
 0x145   : > { %v241_v16 = vsel %vm239_vm3, %v240_v14, %v238_v15 }
 0x146   : > { %v242_v17 = vadd.f32 1e-06, %v241_v16 }
 0x148   : > { %424 = vrcp.f32 %v242_v17 }
 0x152   : > { %v425_v20 = vpop.eup %424 }
 0x153   : > { %v252_v22 = vmul.f32 %v425_v20, %v251_v19 }
 0x155   : > { %v260_v23 = vadd.f32 %v392_v21, %v252_v22 }
 0x157   : > { %v261_v24 = vpack.c.bf16 %v260_v23, %v260_v23 }
 0x159   : > { %407 = vmatmul.mubr.msk.bf16.vlgmr.msra.gmra.mrb[0].mxu0 %vm222_vm0, %v261_v24 }
 0x22c   : > { %v322_v26 = vpop.f32.mrb[0].mxu0 }
 0x22d   : > { %v323_v27 = vadd.f32 %v393_v25, %v322_v26  ;;  %v408_v28 = vpop.f32.mrb[1].mxu0 }
 0x22e   : > { %v325_v29 = vpop.f32.mrb[2].mxu0 }
 0x22f   : > { %v328_v30 = vpack.c.bf16 %v323_v27, %v323_v27  ;;  %v409_v31 = vpop.f32.mrb[3].mxu0 }
 0x231   : > { %330 = vst.msk [vmem:[%s219_s12] sm:$0xf] %vm329_vm4, %v328_v30 }
 0x232 PF: > { %s15_s18 = sadd.s32 1, %s432_s18  }
 0x233   : > { %p12_p4 = scmp.ge.s32.totalorder %s15_s18, 4  }
 0x235   :  { %14 = sbr.rel (!%p12_p4) target bundleno = 1 (0x1), region = 70 }

// kernel: encoder_decoder_forward.43
= control target key start
LH: loop header
LB: loop body
LE: loop exit
PB: predicated region body
PF: predicated region fallthrough
CT: control target
= control target key end

     0   :  { %s419_s15 = smov 0   ;;  %s448_s0 = inlined_call_operand.vmem [shape: bf16[16,32], index: 0, kind: input, shape index: {}]   ;;  %s449_s1 = inlined_call_operand.vmem [shape: bf16[32,32], index: 1, kind: input, shape index: {}]   ;;  %s450_s2 = inlined_call_operand.vmem [shape: f32[1,32], index: 2, kind: input, shape index: {}]   ;;  %s451_s3 = inlined_call_operand.vmem [shape: f32[16,32], index: 3, kind: input, shape index: {}]   ;;  %s452_s4 = inlined_call_operand.vmem [shape: f32[16,32], index: 4, kind: output, shape index: {}]  }
   0x1 LB: > { %s347_s16 = sadd.s32 4294967295, %s390_s15   ;;  %p351_p0 = scmp.ge.s32.totalorder %s390_s15, 1  ;;  %s390_s15 = sphi %s419_s15, %s14_s15  }
   0x2   : > { %p170_p1 = scmp.lt.s32.totalorder %s390_s15, 3 }
   0x4   : > { %p171_p2 = pnand %p351_p0, %p170_p1 }
   0x5   : > { %v382_v0 = vld [vmem:[%s449_s1] sm:$0xff] (!%p171_p2)   ;;  %v392_v1 = vmov (!%p171_p2), 0.0   ;;  %v383_v2 = vld [vmem:[%s449_s1 + $0x8] sm:$0xff] (!%p171_p2)   ;;  %vm393_vm0 = vmmov (!%p171_p2), 0   ;;  %p198_p3 = scmp.lt.s32.totalorder (!%p171_p2), %s347_s16, 1  ;;  %vm235_vm1 = vcmask (!%p171_p2), 261120  }
   0x6   : > { %174 = sbr.rel (%p171_p2) target bundleno = 234 (0xea), region = 36  ;;  %364 = vmatprep.subr.bf16.mxu0 (!%p171_p2), %v392_v1  ;;  %368 = vmatprep.mubr.msk.bf16.mxu0 (!%p171_p2), %vm393_vm0, %v392_v1  ;;  %v355_v4 = vld [vmem:[%s450_s2] ss:$0 sm:$0xff] (!%p171_p2) }
   0x7   : > { %365 = vmatpush3.bf16.msra.mxu0 (!%p171_p2), %v382_v0 }
   0x8   : > { %366 = vmatprep.subr.bf16.mxu0 (!%p171_p2), %v392_v1 }
   0xb   : > { %367 = vmatpush3.bf16.msra.mxu0 (!%p171_p2), %v383_v2 }
   0xd   : > { %s454_s16 = smov (!%p198_p3, %s347_s16), 1 }
   0xe   : > { %s352_s21 = sshll.u32 %s454_s16, 2  ;;  %s353_s25 = sshll.u32 %s454_s16, 3 }
   0xf   : > { %s201_s24 = scalar_lea.vmem %s448_s0, %s352_s21  ;;  %s205_s28 = scalar_lea.vmem %s451_s3, %s353_s25 }
  0x10   : > { %v211_v3 = vld [vmem:[%s201_s24] sm:$0xf]  ;;  %s209_s7 = scalar_lea.vmem %s452_s4, %s353_s25 }
  0x11   : > { %369 = vmatmul.mubr.msk.bf16.vlgmr.msra.gmra.mrb[0].mxu0 %vm235_vm1, %v211_v3  ;;  %v279_v6 = vld [vmem:[%s205_s28] sm:$0xff] }
  0xe4   : > { %v273_v5 = vpop.f32.mrb[0].mxu0 }
  0xe5   : > { %v274_v7 = vadd.f32 %v355_v4, %v273_v5  ;;  %v370_v8 = vpop.f32.mrb[1].mxu0 }
  0xe6   : > { %v276_v9 = vpop.f32.mrb[2].mxu0 }
  0xe7   : > { %v280_v10 = vadd.f32 %v279_v6, %v274_v7  ;;  %v371_v11 = vpop.f32.mrb[3].mxu0 }
  0xe9   : > { %281 = vst.msk [vmem:[%s209_s7] sm:$0xff] %vm235_vm1, %v280_v10 }
  0xea PF: > { %s14_s15 = sadd.s32 1, %s390_s15  }
  0xeb   : > { %p11_p4 = scmp.ge.s32.totalorder %s14_s15, 4  }
  0xed   :  { %13 = sbr.rel (!%p11_p4) target bundleno = 1 (0x1), region = 69 }

// kernel: encoder_decoder_forward.44
= control target key start
LH: loop header
LB: loop body
LE: loop exit
PB: predicated region body
PF: predicated region fallthrough
CT: control target
= control target key end

     0   :  { %s466_s18 = smov 0   ;;  %s505_s0 = inlined_call_operand.vmem [shape: f32[16,32], index: 0, kind: input, shape index: {}]   ;;  %s506_s1 = inlined_call_operand.vmem [shape: f32[1,32], index: 1, kind: input, shape index: {}]   ;;  %s507_s2 = inlined_call_operand.vmem [shape: f32[1,32], index: 2, kind: input, shape index: {}]   ;;  %s508_s3 = inlined_call_operand.vmem [shape: bf16[32,32], index: 3, kind: input, shape index: {}]   ;;  %s509_s4 = inlined_call_operand.vmem [shape: f32[1,32], index: 4, kind: input, shape index: {}]   ;;  %s510_s5 = inlined_call_operand.vmem [shape: bf16[16,32], index: 5, kind: output, shape index: {}]  }
   0x1 LB: > { %s384_s19 = sadd.s32 4294967295, %s432_s18   ;;  %p388_p0 = scmp.ge.s32.totalorder %s432_s18, 1  ;;  %s432_s18 = sphi %s466_s18, %s15_s18  }
   0x2   : > { %p186_p1 = scmp.lt.s32.totalorder %s432_s18, 3 }
   0x4   : > { %p187_p2 = pnand %p388_p0, %p186_p1 }
   0x5   : > { %p212_p3 = scmp.lt.s32.totalorder (!%p187_p2), %s384_s19, 1  ;;  %vm222_vm0 = vcmask (!%p187_p2), 261120   ;;  %v420_v7 = vld [vmem:[%s508_s3] sm:$0xff] (!%p187_p2)   ;;  %v434_v8 = vmov (!%p187_p2), 0.0   ;;  %vm435_vm1 = vmmov (!%p187_p2), 0   ;;  %v421_v9 = vld [vmem:[%s508_s3 + $0x8] sm:$0xff] (!%p187_p2)  }
   0x6   : > { %190 = sbr.rel (%p187_p2) target bundleno = 562 (0x232), region = 40  ;;  %402 = vmatprep.subr.bf16.mxu0 (!%p187_p2), %v434_v8  ;;  %406 = vmatprep.mubr.msk.bf16.mxu0 (!%p187_p2), %vm435_vm1, %v434_v8  ;;  %v391_v18 = vld [vmem:[%s506_s1] ss:$0 sm:$0xff] (!%p187_p2)  ;;  %vm329_vm4 = vcmask (!%p187_p2), 257024  }
   0x7   : > { %403 = vmatpush3.bf16.msra.mxu0 (!%p187_p2), %v420_v7  ;;  %v392_v21 = vld [vmem:[%s507_s2] ss:$0 sm:$0xff] (!%p187_p2) }
   0x8   : > { %404 = vmatprep.subr.bf16.mxu0 (!%p187_p2), %v434_v8  ;;  %v393_v25 = vld [vmem:[%s509_s4] ss:$0 sm:$0xff] (!%p187_p2) }
   0xb   : > { %405 = vmatpush3.bf16.msra.mxu0 (!%p187_p2), %v421_v9 }
   0xd   : > { %s512_s19 = smov (!%p212_p3, %s384_s19), 1 }
   0xe   : > { %s389_s20 = sshll.u32 %s512_s19, 3  ;;  %s390_s9 = sshll.u32 %s512_s19, 2 }
   0xf   : > { %s215_s23 = scalar_lea.vmem %s505_s0, %s389_s20  ;;  %s219_s12 = scalar_lea.vmem %s510_s5, %s390_s9 }
  0x10   : > { %v221_v0 = vld [vmem:[%s215_s23] sm:$0xff] }
  0x11   : > { %v223_v1 = vsel %vm222_vm0, %v221_v0, 0.0 }
  0x12   : > { %224 = vadd.xlane.f32.xlu0 %v223_v1 }
  0x9f   : > { %v225_v2 = vpop.xlane.xlu0 %224 }
  0xa0   : > { %v227_v3 = vmul.f32 0.03125, %v225_v2 }
  0xa2   : > { %v228_v4 = vsub.f32 %v221_v0, %v227_v3 }
  0xa4   : > { %v229_v5 = vmul.f32 %v228_v4, %v228_v4  ;;  %v251_v19 = vmul.f32 %v391_v18, %v228_v4 }
  0xa6   : > { %v230_v6 = vsel %vm222_vm0, %v229_v5, 0.0 }
  0xa7   : > { %231 = vadd.xlane.f32.xlu0 %v230_v6 }
 0x134   : > { %v232_v10 = vpop.xlane.xlu0 %231 }
 0x135   : > { %v234_v11 = vmul.f32 0.032258064, %v232_v10 }
 0x137   : > { %422 = vrsqrt.f32 %v234_v11  ;;  %vm237_vm2 = vcmp.eq.f32.partialorder %v234_v11, inf  ;;  %v240_v14 = vand.u32 2147483648, %v234_v11  ;;  %vm239_vm3 = vcmp.eq.f32.partialorder %v234_v11, 0.0 }
 0x141   : > { %v423_v12 = vpop.eup %422 }
 0x142   : > { %v236_v13 = vmul.f32 %v423_v12, %v234_v11 }
 0x144   : > { %v238_v15 = vsel %vm237_vm2, %v234_v11, %v236_v13 }
 0x145   : > { %v241_v16 = vsel %vm239_vm3, %v240_v14, %v238_v15 }
 0x146   : > { %v242_v17 = vadd.f32 1e-06, %v241_v16 }
 0x148   : > { %424 = vrcp.f32 %v242_v17 }
 0x152   : > { %v425_v20 = vpop.eup %424 }
 0x153   : > { %v252_v22 = vmul.f32 %v425_v20, %v251_v19 }
 0x155   : > { %v260_v23 = vadd.f32 %v392_v21, %v252_v22 }
 0x157   : > { %v261_v24 = vpack.c.bf16 %v260_v23, %v260_v23 }
 0x159   : > { %407 = vmatmul.mubr.msk.bf16.vlgmr.msra.gmra.mrb[0].mxu0 %vm222_vm0, %v261_v24 }
 0x22c   : > { %v322_v26 = vpop.f32.mrb[0].mxu0 }
 0x22d   : > { %v323_v27 = vadd.f32 %v393_v25, %v322_v26  ;;  %v408_v28 = vpop.f32.mrb[1].mxu0 }
 0x22e   : > { %v325_v29 = vpop.f32.mrb[2].mxu0 }
 0x22f   : > { %v328_v30 = vpack.c.bf16 %v323_v27, %v323_v27  ;;  %v409_v31 = vpop.f32.mrb[3].mxu0 }
 0x231   : > { %330 = vst.msk [vmem:[%s219_s12] sm:$0xf] %vm329_vm4, %v328_v30 }
 0x232 PF: > { %s15_s18 = sadd.s32 1, %s432_s18  }
 0x233   : > { %p12_p4 = scmp.ge.s32.totalorder %s15_s18, 4  }
 0x235   :  { %14 = sbr.rel (!%p12_p4) target bundleno = 1 (0x1), region = 70 }

// kernel: encoder_decoder_forward.34
= control target key start
LH: loop header
LB: loop body
LE: loop exit
PB: predicated region body
PF: predicated region fallthrough
CT: control target
= control target key end

     0   :  { %s446_s15 = smov 0   ;;  %s481_s0 = inlined_call_operand.vmem [shape: bf16[16,64], index: 0, kind: input, shape index: {}]   ;;  %s482_s1 = inlined_call_operand.vmem [shape: bf16[64,32], index: 1, kind: input, shape index: {}]   ;;  %s483_s2 = inlined_call_operand.vmem [shape: f32[1,32], index: 2, kind: input, shape index: {}]   ;;  %s484_s3 = inlined_call_operand.vmem [shape: f32[16,32], index: 3, kind: input, shape index: {}]   ;;  %s485_s4 = inlined_call_operand.vmem [shape: f32[16,32], index: 4, kind: output, shape index: {}]  }
   0x1 LB: > { %s364_s16 = sadd.s32 4294967295, %s417_s15   ;;  %p368_p0 = scmp.ge.s32.totalorder %s417_s15, 1  ;;  %s417_s15 = sphi %s446_s15, %s14_s15  }
   0x2   : > { %p170_p1 = scmp.lt.s32.totalorder %s417_s15, 3 }
   0x4   : > { %p171_p2 = pnand %p368_p0, %p170_p1 }
   0x5   : > { %v407_v0 = vld [vmem:[%s482_s1] sm:$0xff] (!%p171_p2)   ;;  %v419_v1 = vmov (!%p171_p2), 0.0   ;;  %v408_v2 = vld [vmem:[%s482_s1 + $0x8] sm:$0xff] (!%p171_p2)   ;;  %vm420_vm0 = vmmov (!%p171_p2), 0   ;;  %p198_p3 = scmp.lt.s32.totalorder (!%p171_p2), %s364_s16, 1  ;;  %v409_v3 = vld [vmem:[%s482_s1 + $0x10] sm:$0xff] (!%p171_p2)  }
   0x6   : > { %174 = sbr.rel (%p171_p2) target bundleno = 239 (0xef), region = 36  ;;  %385 = vmatprep.subr.bf16.mxu0 (!%p171_p2), %v419_v1  ;;  %393 = vmatprep.mubr.msk.bf16.mxu0 (!%p171_p2), %vm420_vm0, %v419_v1  ;;  %v410_v4 = vld [vmem:[%s482_s1 + $0x18] sm:$0xff] (!%p171_p2)   ;;  %vm251_vm1 = vcmask (!%p171_p2), 523264   ;;  %v372_v6 = vld [vmem:[%s483_s2] ss:$0 sm:$0xff] (!%p171_p2)  ;;  %vm297_vm2 = vcmask (!%p171_p2), 261120  }
   0x7   : > { %386 = vmatpush3.bf16.msra.mxu0 (!%p171_p2), %v407_v0 }
   0x8   : > { %387 = vmatprep.subr.bf16.mxu0 (!%p171_p2), %v419_v1 }
   0xb   : > { %388 = vmatpush3.bf16.msra.mxu0 (!%p171_p2), %v408_v2 }
   0xc   : > { %389 = vmatprep.subr.bf16.mxu0 (!%p171_p2), %v419_v1 }
   0xd   : > { %s487_s16 = smov (!%p198_p3, %s364_s16), 1 }
   0xe   : > { %s369_s23 = sshll.u32 %s487_s16, 2  ;;  %s370_s29 = sshll.u32 %s487_s16, 3 }
   0xf   : > { %390 = vmatpush3.bf16.msra.mxu0 %v409_v3  ;;  %s201_s28 = scalar_lea.vmem %s481_s0, %s369_s23  ;;  %s205_s6 = scalar_lea.vmem %s484_s3, %s370_s29 }
  0x10   : > { %391 = vmatprep.subr.bf16.mxu0 %v419_v1  ;;  %v211_v5 = vld [vmem:[%s201_s28] sm:$0xf]  ;;  %s209_s11 = scalar_lea.vmem %s485_s4, %s370_s29 }
  0x11   : > { %v295_v8 = vld [vmem:[%s205_s6] sm:$0xff] }
  0x13   : > { %392 = vmatpush3.bf16.msra.mxu0 %v410_v4 }
  0x16   : > { %394 = vmatmul.mubr.msk.bf16.vlgmr.msra.gmra.mrb[0].mxu0 %vm251_vm1, %v211_v5 }
  0xe9   : > { %v289_v7 = vpop.f32.mrb[0].mxu0 }
  0xea   : > { %v290_v9 = vadd.f32 %v372_v6, %v289_v7  ;;  %v395_v10 = vpop.f32.mrb[1].mxu0 }
  0xeb   : > { %v292_v11 = vpop.f32.mrb[2].mxu0 }
  0xec   : > { %v296_v12 = vadd.f32 %v295_v8, %v290_v9  ;;  %v396_v13 = vpop.f32.mrb[3].mxu0 }
  0xee   : > { %298 = vst.msk [vmem:[%s209_s11] sm:$0xff] %vm297_vm2, %v296_v12 }
  0xef PF: > { %s14_s15 = sadd.s32 1, %s417_s15  }
  0xf0   : > { %p11_p4 = scmp.ge.s32.totalorder %s14_s15, 4  }
  0xf2   :  { %13 = sbr.rel (!%p11_p4) target bundleno = 1 (0x1), region = 69 }

// kernel: encoder_decoder_forward.45
= control target key start
LH: loop header
LB: loop body
LE: loop exit
PB: predicated region body
PF: predicated region fallthrough
CT: control target
= control target key end

     0   :  { %s358_s12 = smov 0   ;;  %s384_s0 = inlined_call_operand.vmem [shape: f32[16,32], index: 0, kind: input, shape index: {}]   ;;  %s385_s1 = inlined_call_operand.vmem [shape: bf16[32,64], index: 1, kind: input, shape index: {}]   ;;  %s386_s2 = inlined_call_operand.vmem [shape: f32[1,64], index: 2, kind: input, shape index: {}]   ;;  %s387_s3 = inlined_call_operand.vmem [shape: bf16[16,64], index: 3, kind: output, shape index: {}]  }
   0x1 LB: > { %s292_s13 = sadd.s32 4294967295, %s334_s12   ;;  %p296_p0 = scmp.ge.s32.totalorder %s334_s12, 1  ;;  %s334_s12 = sphi %s358_s12, %s13_s12  }
   0x2   : > { %p136_p1 = scmp.lt.s32.totalorder %s334_s12, 3 }
   0x4   : > { %p137_p2 = pnand %p296_p0, %p136_p1 }
   0x5   : > { %v326_v0 = vld [vmem:[%s385_s1] sm:$0xff] (!%p137_p2)   ;;  %v336_v1 = vmov (!%p137_p2), 0.0   ;;  %v327_v2 = vld [vmem:[%s385_s1 + $0x8] sm:$0xff] (!%p137_p2)   ;;  %vm337_vm0 = vmmov (!%p137_p2), 0   ;;  %p158_p3 = scmp.lt.s32.totalorder (!%p137_p2), %s292_s13, 1  ;;  %vm192_vm1 = vcmask (!%p137_p2), 261120  }
   0x6   : > { %140 = sbr.rel (%p137_p2) target bundleno = 236 (0xec), region = 32  ;;  %308 = vmatprep.subr.bf16.mxu0 (!%p137_p2), %v336_v1  ;;  %312 = vmatprep.mubr.msk.bf16.mxu0 (!%p137_p2), %vm337_vm0, %v336_v1  ;;  %v299_v5 = vld [vmem:[%s386_s2] ss:$0 sm:$0xff] (!%p137_p2)  ;;  %vm237_vm2 = vcmask (!%p137_p2), 519168  }
   0x7   : > { %309 = vmatpush3.bf16.msra.mxu0 (!%p137_p2), %v326_v0 }
   0x8   : > { %310 = vmatprep.subr.bf16.mxu0 (!%p137_p2), %v336_v1 }
   0xb   : > { %311 = vmatpush3.bf16.msra.mxu0 (!%p137_p2), %v327_v2 }
   0xd   : > { %s389_s13 = smov (!%p158_p3, %s292_s13), 1 }
   0xe   : > { %s297_s18 = sshll.u32 %s389_s13, 3  ;;  %s298_s24 = sshll.u32 %s389_s13, 2 }
   0xf   : > { %s161_s21 = scalar_lea.vmem %s384_s0, %s297_s18  ;;  %s165_s27 = scalar_lea.vmem %s387_s3, %s298_s24 }
  0x10   : > { %v167_v3 = vld [vmem:[%s161_s21] sm:$0xff] }
  0x11   : > { %v168_v4 = vpack.c.bf16 %v167_v3, %v167_v3 }
  0x13   : > { %313 = vmatmul.mubr.msk.bf16.vlgmr.msra.gmra.mrb[0].mxu0 %vm192_vm1, %v168_v4 }
  0xe6   : > { %v230_v6 = vpop.f32.mrb[0].mxu0 }
  0xe7   : > { %v231_v7 = vadd.f32 %v299_v5, %v230_v6  ;;  %v314_v8 = vpop.f32.mrb[1].mxu0 }
  0xe8   : > { %v233_v9 = vpop.f32.mrb[2].mxu0 }
  0xe9   : > { %v236_v10 = vpack.c.bf16 %v231_v7, %v231_v7  ;;  %v315_v11 = vpop.f32.mrb[3].mxu0 }
  0xeb   : > { %238 = vst.msk [vmem:[%s165_s27] sm:$0xf] %vm237_vm2, %v236_v10 }
  0xec PF: > { %s13_s12 = sadd.s32 1, %s334_s12  }
  0xed   : > { %p10_p4 = scmp.ge.s32.totalorder %s13_s12, 4  }
  0xef   :  { %12 = sbr.rel (!%p10_p4) target bundleno = 1 (0x1), region = 62 }

// kernel: encoder_decoder_forward.33
= control target key start
LH: loop header
LB: loop body
LE: loop exit
PB: predicated region body
PF: predicated region fallthrough
CT: control target
= control target key end

     0   :  { %s467_s18 = smov 0   ;;  %s506_s0 = inlined_call_operand.vmem [shape: f32[16,32], index: 0, kind: input, shape index: {}]   ;;  %s507_s1 = inlined_call_operand.vmem [shape: f32[1,32], index: 1, kind: input, shape index: {}]   ;;  %s508_s2 = inlined_call_operand.vmem [shape: f32[1,32], index: 2, kind: input, shape index: {}]   ;;  %s509_s3 = inlined_call_operand.vmem [shape: bf16[32,64], index: 3, kind: input, shape index: {}]   ;;  %s510_s4 = inlined_call_operand.vmem [shape: f32[1,64], index: 4, kind: input, shape index: {}]   ;;  %s511_s5 = inlined_call_operand.vmem [shape: bf16[16,64], index: 5, kind: output, shape index: {}]  }
   0x1 LB: > { %s385_s19 = sadd.s32 4294967295, %s433_s18   ;;  %p389_p0 = scmp.ge.s32.totalorder %s433_s18, 1  ;;  %s433_s18 = sphi %s467_s18, %s15_s18  }
   0x2   : > { %p186_p1 = scmp.lt.s32.totalorder %s433_s18, 3 }
   0x4   : > { %p187_p2 = pnand %p389_p0, %p186_p1 }
   0x5   : > { %p212_p3 = scmp.lt.s32.totalorder (!%p187_p2), %s385_s19, 1  ;;  %vm222_vm0 = vcmask (!%p187_p2), 261120   ;;  %v421_v7 = vld [vmem:[%s509_s3] sm:$0xff] (!%p187_p2)   ;;  %v435_v8 = vmov (!%p187_p2), 0.0   ;;  %vm436_vm1 = vmmov (!%p187_p2), 0   ;;  %v422_v9 = vld [vmem:[%s509_s3 + $0x8] sm:$0xff] (!%p187_p2)  }
   0x6   : > { %190 = sbr.rel (%p187_p2) target bundleno = 564 (0x234), region = 40  ;;  %403 = vmatprep.subr.bf16.mxu0 (!%p187_p2), %v435_v8  ;;  %407 = vmatprep.mubr.msk.bf16.mxu0 (!%p187_p2), %vm436_vm1, %v435_v8  ;;  %v392_v18 = vld [vmem:[%s507_s1] ss:$0 sm:$0xff] (!%p187_p2)  ;;  %vm330_vm4 = vcmask (!%p187_p2), 519168  }
   0x7   : > { %404 = vmatpush3.bf16.msra.mxu0 (!%p187_p2), %v421_v7  ;;  %v393_v21 = vld [vmem:[%s508_s2] ss:$0 sm:$0xff] (!%p187_p2) }
   0x8   : > { %405 = vmatprep.subr.bf16.mxu0 (!%p187_p2), %v435_v8  ;;  %v394_v25 = vld [vmem:[%s510_s4] ss:$0 sm:$0xff] (!%p187_p2) }
   0xb   : > { %406 = vmatpush3.bf16.msra.mxu0 (!%p187_p2), %v422_v9 }
   0xd   : > { %s513_s19 = smov (!%p212_p3, %s385_s19), 1 }
   0xe   : > { %s390_s20 = sshll.u32 %s513_s19, 3  ;;  %s391_s9 = sshll.u32 %s513_s19, 2 }
   0xf   : > { %s215_s23 = scalar_lea.vmem %s506_s0, %s390_s20  ;;  %s219_s12 = scalar_lea.vmem %s511_s5, %s391_s9 }
  0x10   : > { %v221_v0 = vld [vmem:[%s215_s23] sm:$0xff] }
  0x11   : > { %v223_v1 = vsel %vm222_vm0, %v221_v0, 0.0 }
  0x12   : > { %224 = vadd.xlane.f32.xlu0 %v223_v1 }
  0x9f   : > { %v225_v2 = vpop.xlane.xlu0 %224 }
  0xa0   : > { %v227_v3 = vmul.f32 0.03125, %v225_v2 }
  0xa2   : > { %v228_v4 = vsub.f32 %v221_v0, %v227_v3 }
  0xa4   : > { %v229_v5 = vmul.f32 %v228_v4, %v228_v4  ;;  %v251_v19 = vmul.f32 %v392_v18, %v228_v4 }
  0xa6   : > { %v230_v6 = vsel %vm222_vm0, %v229_v5, 0.0 }
  0xa7   : > { %231 = vadd.xlane.f32.xlu0 %v230_v6 }
 0x134   : > { %v232_v10 = vpop.xlane.xlu0 %231 }
 0x135   : > { %v234_v11 = vmul.f32 0.032258064, %v232_v10 }
 0x137   : > { %423 = vrsqrt.f32 %v234_v11  ;;  %vm237_vm2 = vcmp.eq.f32.partialorder %v234_v11, inf  ;;  %v240_v14 = vand.u32 2147483648, %v234_v11  ;;  %vm239_vm3 = vcmp.eq.f32.partialorder %v234_v11, 0.0 }
 0x141   : > { %v424_v12 = vpop.eup %423 }
 0x142   : > { %v236_v13 = vmul.f32 %v424_v12, %v234_v11 }
 0x144   : > { %v238_v15 = vsel %vm237_vm2, %v234_v11, %v236_v13 }
 0x145   : > { %v241_v16 = vsel %vm239_vm3, %v240_v14, %v238_v15 }
 0x146   : > { %v242_v17 = vadd.f32 1e-06, %v241_v16 }
 0x148   : > { %425 = vrcp.f32 %v242_v17 }
 0x152   : > { %v426_v20 = vpop.eup %425 }
 0x153   : > { %v252_v22 = vmul.f32 %v426_v20, %v251_v19 }
 0x155   : > { %v260_v23 = vadd.f32 %v393_v21, %v252_v22 }
 0x157   : > { %v261_v24 = vpack.c.bf16 %v260_v23, %v260_v23 }
 0x159   : > { %408 = vmatmul.mubr.msk.bf16.vlgmr.msra.gmra.mrb[0].mxu0 %vm222_vm0, %v261_v24 }
 0x22c   : > { %v322_v26 = vpop.f32.mrb[0].mxu0 }
 0x22d   : > { %v323_v27 = vadd.f32 %v394_v25, %v322_v26  ;;  %v409_v28 = vpop.f32.mrb[1].mxu0 }
 0x22e   : > { %v325_v29 = vpop.f32.mrb[2].mxu0 }
 0x22f   : > { %v328_v30 = vmax.f32 %v323_v27, 0.0  ;;  %v410_v31 = vpop.f32.mrb[3].mxu0 }
 0x231   : > { %v329_v32 = vpack.c.bf16 %v328_v30, %v328_v30 }
 0x233   : > { %331 = vst.msk [vmem:[%s219_s12] sm:$0xf] %vm330_vm4, %v329_v32 }
 0x234 PF: > { %s15_s18 = sadd.s32 1, %s433_s18  }
 0x235   : > { %p12_p4 = scmp.ge.s32.totalorder %s15_s18, 4  }
 0x237   :  { %14 = sbr.rel (!%p12_p4) target bundleno = 1 (0x1), region = 70 }

// kernel: encoder_decoder_forward.31
= control target key start
LH: loop header
LB: loop body
LE: loop exit
PB: predicated region body
PF: predicated region fallthrough
CT: control target
= control target key end

     0   :  { %s1097_s15 = smov 0   ;;  %s1099_s16 = smov 0   ;;  %s1201_s0 = inlined_call_operand.vmem [shape: bf16[2,4,8,8], index: 0, kind: input, shape index: {}]   ;;  %s1202_s1 = inlined_call_operand.vmem [shape: bf16[2,4,8,8], index: 1, kind: input, shape index: {}]   ;;  %s1203_s2 = inlined_call_operand.vmem [shape: bf16[2,4,8,8], index: 2, kind: input, shape index: {}]   ;;  %s1204_s3 = inlined_call_operand.vmem [shape: s32[2,1,8], index: 3, kind: input, shape index: {}]   ;;  %s1205_s4 = inlined_call_operand.vmem [shape: bf16[2,4,8,8], index: 4, kind: output, shape index: {}]  }
   0x1   :  { %s1101_s17 = smov 0  }
   0x2 LB: > { %s26_s18 = sadd.s32 1, %s1063_s16  ;;  %p915_p0 = scmp.ge.s32.totalorder %s1067_s17, 1  ;;  %s1067_s17 = sphi %s1101_s17, %s14_s17   ;;  %s1063_s16 = sphi %s1099_s16, %s1207_s16   ;;  %s1059_s15 = sphi %s1097_s15, %s1206_s15  }
   0x3   : > { %p28_p1 = scmp.ge.s32.totalorder %s26_s18, 2  ;;  %p225_p2 = scmp.lt.s32.totalorder %s1067_s17, 3 }
   0x5   : > { %s1209_s18 = smov (%p28_p1, %s26_s18), 0  ;;  %p226_p3 = pnand %p915_p0, %p225_p2 }
   0x6   : > { %p281_p4 = scmp.lt.s32.totalorder (!%p226_p3), %s1059_s15, 1  ;;  %v1069_v0 = vmov (!%p226_p3), 0.0   ;;  %vm1070_vm0 = vmmov (!%p226_p3), 0   ;;  %vm337_vm1 = vcmask (!%p226_p3), 64512   ;;  %v528_v13 = vlaneseq (!%p226_p3) }
   0x7   : > { %229 = sbr.rel (%p226_p3) target bundleno = 784 (0x310), region = 36  ;;  %954 = vmatprep.subr.bf16.mxu0 (!%p226_p3), %v1069_v0  ;;  %960 = vmatprep.subr.bf16.mxu1 (!%p226_p3), %v1069_v0  ;;  %v1071_v17 = vmov (!%p226_p3), 0   ;;  %vm588_vm4 = vcmask (!%p226_p3), 1043456   ;;  %vm774_vm5 = vcmask (!%p226_p3), 60416  }
   0x8   : > { %956 = vmatprep.mubr.msk.bf16.mxu0 (!%p226_p3), %vm1070_vm0, %v1069_v0  ;;  %962 = vmatprep.mubr.msk.bf16.mxu1 (!%p226_p3), %vm1070_vm0, %v1069_v0  ;;  %v529_v15 = vshrl.u32 (!%p226_p3), %v528_v13, 7 }
   0xa   : > { %v530_v16 = vsub.s32 (!%p226_p3), 0, %v529_v15 }
   0xe   : > { %s1211_s15 = smov (!%p281_p4, %s1059_s15), 1 }
   0xf   : > { %s1124_s19 = sshll.u32 %s1211_s15, 4  ;;  %s312_s28 = scalar_lea.vmem %s1204_s3, %s1211_s15 }
  0x10   : > { %s298_s22 = scalar_lea.vmem %s1202_s1, %s1124_s19  ;;  %s288_s25 = scalar_lea.vmem %s1201_s0, %s1124_s19  ;;  %v336_v14 = vld [vmem:[%s312_s28] sm:$0x1] }
  0x11   : > { %v328_v1 = vld [vmem:[%s298_s22] sm:$0xf]  ;;  %v329_v2 = vld [vmem:[%s298_s22 + $0x4] sm:$0xf]  ;;  %v330_v5 = vld [vmem:[%s298_s22 + $0x8] sm:$0xf]  ;;  %s308_s5 = scalar_lea.vmem %s1203_s2, %s1124_s19  ;;  %s321_s8 = scalar_lea.vmem %s1205_s4, %s1124_s19 }
  0x12   : > { %v342_v3 = vsel %vm337_vm1, %v328_v1, 0  ;;  %v388_v4 = vsel %vm337_vm1, %v329_v2, 0  ;;  %v331_v6 = vld [vmem:[%s298_s22 + $0xc] sm:$0xf]  ;;  %v324_v7 = vld [vmem:[%s288_s25] sm:$0xf] }
  0x13   : > { %955 = vmatpush3.bf16.xpose.msra.mxu0 %v342_v3  ;;  %961 = vmatpush3.bf16.xpose.msra.mxu1 %v388_v4  ;;  %v325_v8 = vld [vmem:[%s288_s25 + $0x4] sm:$0xf]  ;;  %v434_v9 = vsel %vm337_vm1, %v330_v5, 0  ;;  %v480_v10 = vsel %vm337_vm1, %v331_v6, 0  ;;  %v326_v11 = vld [vmem:[%s288_s25 + $0x8] sm:$0xf] }
  0x14   : > { %966 = vmatprep.subr.bf16.mxu0 %v1069_v0  ;;  %972 = vmatprep.subr.bf16.mxu1 %v1069_v0  ;;  %v327_v12 = vld [vmem:[%s288_s25 + $0xc] sm:$0xf]  ;;  %vm526_vm2 = vcmp.eq.s32.totalorder %v336_v14, 0  ;;  %v332_v5 = vld [vmem:[%s308_s5] sm:$0xf] }
  0x15   : > { %v527_v18 = vsel %vm526_vm2, 1, %v1071_v17  ;;  %v590_v6 = vsel %vm588_vm4, %v332_v5, 0 }
  0x16   : > { %v531_v19 = vrot.slane %v527_v18, %v530_v16 }
  0x18   : > { %vm532_vm3 = vcmp.eq.s32.totalorder %v531_v19, 1 }
  0x1a   : > { %957 = vmatmul.mubr.msk.bf16.vlgmr.msra.gmra.mrb[0].mxu0 %vm337_vm1, %v324_v7  ;;  %963 = vmatmul.mubr.msk.bf16.vlgmr.msra.gmra.mrb[0].mxu1 %vm337_vm1, %v325_v8  ;;  %v333_v7 = vld [vmem:[%s308_s5 + $0x4] sm:$0xf] }
  0x1b   : > { %967 = vmatpush3.bf16.xpose.msra.mxu0 %v434_v9  ;;  %973 = vmatpush3.bf16.xpose.msra.mxu1 %v480_v10  ;;  %v636_v8 = vsel %vm588_vm4, %v333_v7, 0  ;;  %v334_v9 = vld [vmem:[%s308_s5 + $0x8] sm:$0xf] }
  0x1c   : > { %968 = vmatprep.mubr.msk.bf16.mxu0 %vm1070_vm0, %v1069_v0  ;;  %974 = vmatprep.mubr.msk.bf16.mxu1 %vm1070_vm0, %v1069_v0  ;;  %v682_v10 = vsel %vm588_vm4, %v334_v9, 0 }
  0x1d   : > { %978 = vmatprep.subr.bf16.mxu0 %v1069_v0  ;;  %984 = vmatprep.subr.bf16.mxu1 %v1069_v0 }
  0x22   : > { %969 = vmatmul.mubr.msk.bf16.vlgmr.msra.gmra.mrb[4].mxu0 %vm337_vm1, %v326_v11  ;;  %975 = vmatmul.mubr.msk.bf16.vlgmr.msra.gmra.mrb[4].mxu1 %vm337_vm1, %v327_v12  ;;  %v335_v11 = vld [vmem:[%s308_s5 + $0xc] sm:$0xf] }
  0x23   : > { %980 = vmatprep.mubr.msk.bf16.mxu0 %vm1070_vm0, %v1069_v0  ;;  %986 = vmatprep.mubr.msk.bf16.mxu1 %vm1070_vm0, %v1069_v0  ;;  %v728_v12 = vsel %vm588_vm4, %v335_v11, 0 }
  0x24   : > { %979 = vmatpush3.bf16.msra.mxu0 %v590_v6  ;;  %985 = vmatpush3.bf16.msra.mxu1 %v636_v8 }
  0x25   : > { %990 = vmatprep.subr.bf16.mxu0 %v1069_v0  ;;  %996 = vmatprep.subr.bf16.mxu1 %v1069_v0 }
  0xed   : > { %v378_v20 = vpop.f32.mrb[0].mxu0  ;;  %v424_v21 = vpop.f32.mrb[0].mxu1 }
  0xee   : > { %v522_v22 = vmul.f32 0.35355338, %v378_v20  ;;  %v958_v23 = vpop.f32.mrb[1].mxu0  ;;  %v523_v24 = vmul.f32 0.35355338, %v424_v21  ;;  %v964_v25 = vpop.f32.mrb[1].mxu1 }
  0xef   : > { %v381_v26 = vpop.f32.mrb[2].mxu0  ;;  %v427_v27 = vpop.f32.mrb[2].mxu1 }
  0xf0   : > { %v959_v28 = vpop.f32.mrb[3].mxu0  ;;  %v965_v29 = vpop.f32.mrb[3].mxu1  ;;  %v533_v30 = vsel %vm532_vm3, -1e+09, %v522_v22  ;;  %v534_v31 = vsel %vm532_vm3, -1e+09, %v523_v24 }
  0xf1   : > { %v537_v32 = vsel %vm337_vm1, %v533_v30, -inf  ;;  %v540_v33 = vsel %vm337_vm1, %v534_v31, -inf }
  0xf2   : > { %538 = vmax.xlane.f32.xlu0 %v537_v32 }
  0xf5   : > { %v470_v34 = vpop.f32.mrb[4].mxu0  ;;  %v516_v35 = vpop.f32.mrb[4].mxu1 }
  0xf6   : > { %v524_v36 = vmul.f32 0.35355338, %v470_v34  ;;  %541 = vmax.xlane.f32.xlu0 %v540_v33  ;;  %v970_v37 = vpop.f32.mrb[5].mxu0  ;;  %v525_v38 = vmul.f32 0.35355338, %v516_v35  ;;  %v976_v39 = vpop.f32.mrb[5].mxu1 }
  0xf7   : > { %v473_v40 = vpop.f32.mrb[6].mxu0  ;;  %v519_v41 = vpop.f32.mrb[6].mxu1 }
  0xf8   : > { %v971_v42 = vpop.f32.mrb[7].mxu0  ;;  %v977_v43 = vpop.f32.mrb[7].mxu1  ;;  %v535_v44 = vsel %vm532_vm3, -1e+09, %v524_v36  ;;  %v536_v45 = vsel %vm532_vm3, -1e+09, %v525_v38 }
  0xf9   : > { %v543_v46 = vsel %vm337_vm1, %v535_v44, -inf  ;;  %v546_v47 = vsel %vm337_vm1, %v536_v45, -inf }
  0xfa   : > { %544 = vmax.xlane.f32.xlu1 %v543_v46 }
  0xfe   : > { %547 = vmax.xlane.f32.xlu1 %v546_v47 }
 0x17f   : > { %v539_v48 = vpop.xlane.xlu0 %538 }
 0x180   : > { %v549_v49 = vsub.f32 %v533_v30, %v539_v48 }
 0x182   : > { %v553_v50 = vmul.f32 1.442695, %v549_v49 }
 0x183   : > { %v542_v51 = vpop.xlane.xlu0 %541 }
 0x184   : > { %1029 = vpow2.f32 %v553_v50  ;;  %v550_v52 = vsub.f32 %v534_v31, %v542_v51 }
 0x186   : > { %v555_v53 = vmul.f32 1.442695, %v550_v52 }
 0x187   : > { %v545_v54 = vpop.xlane.xlu1 %544 }
 0x188   : > { %1031 = vpow2.f32 %v555_v53  ;;  %v551_v55 = vsub.f32 %v535_v44, %v545_v54 }
 0x18a   : > { %v557_v56 = vmul.f32 1.442695, %v551_v55 }
 0x18b   : > { %v548_v57 = vpop.xlane.xlu1 %547 }
 0x18c   : > { %1033 = vpow2.f32 %v557_v56  ;;  %v552_v58 = vsub.f32 %v536_v45, %v548_v57 }
 0x18e   : > { %v1030_v59 = vpop.eup %1029  ;;  %v559_v60 = vmul.f32 1.442695, %v552_v58 }
 0x18f   : > { %v561_v61 = vsel %vm337_vm1, %v1030_v59, 0.0 }
 0x190   : > { %1035 = vpow2.f32 %v559_v60  ;;  %562 = vadd.xlane.f32.xlu0 %v561_v61 }
 0x192   : > { %v1032_v62 = vpop.eup %1031 }
 0x193   : > { %v564_v63 = vsel %vm337_vm1, %v1032_v62, 0.0 }
 0x194   : > { %565 = vadd.xlane.f32.xlu1 %v564_v63 }
 0x196   : > { %v1034_v1 = vpop.eup %1033 }
 0x197   : > { %v567_v2 = vsel %vm337_vm1, %v1034_v1, 0.0 }
 0x198   : > { %568 = vadd.xlane.f32.xlu0 %v567_v2 }
 0x19a   : > { %v1036_v3 = vpop.eup %1035 }
 0x19b   : > { %v570_v4 = vsel %vm337_vm1, %v1036_v3, 0.0 }
 0x19c   : > { %571 = vadd.xlane.f32.xlu1 %v570_v4 }
 0x21d   : > { %v563_v13 = vpop.xlane.xlu0 %562 }
 0x21e   : > { %1037 = vrcp.f32 %v563_v13 }
 0x221   : > { %v566_v14 = vpop.xlane.xlu1 %565 }
 0x222   : > { %1039 = vrcp.f32 %v566_v14 }
 0x225   : > { %v569_v15 = vpop.xlane.xlu0 %568 }
 0x226   : > { %1041 = vrcp.f32 %v569_v15 }
 0x228   : > { %v1038_v16 = vpop.eup %1037 }
 0x229   : > { %v577_v17 = vmul.f32 %v1038_v16, %v1030_v59  ;;  %v572_v18 = vpop.xlane.xlu1 %571 }
 0x22a   : > { %1043 = vrcp.f32 %v572_v18 }
 0x22b   : > { %v581_v19 = vpack.c.bf16 %v577_v17, %v577_v17 }
 0x22c   : > { %v1040_v20 = vpop.eup %1039 }
 0x22d   : > { %v578_v21 = vmul.f32 %v1040_v20, %v1032_v62  ;;  %981 = vmatmul.mubr.msk.bf16.vlgmr.msra.gmra.mrb[8].mxu0 %vm337_vm1, %v581_v19 }
 0x22e   : > { %991 = vmatpush3.bf16.msra.mxu0 %v682_v10  ;;  %992 = vmatprep.mubr.msk.bf16.mxu0 %vm1070_vm0, %v1069_v0 }
 0x22f   : > { %v582_v22 = vpack.c.bf16 %v578_v21, %v578_v21 }
 0x230   : > { %v1042_v23 = vpop.eup %1041 }
 0x231   : > { %v579_v24 = vmul.f32 %v1042_v23, %v1034_v1  ;;  %987 = vmatmul.mubr.msk.bf16.vlgmr.msra.gmra.mrb[8].mxu1 %vm337_vm1, %v582_v22 }
 0x232   : > { %997 = vmatpush3.bf16.msra.mxu1 %v728_v12  ;;  %998 = vmatprep.mubr.msk.bf16.mxu1 %vm1070_vm0, %v1069_v0 }
 0x233   : > { %v583_v25 = vpack.c.bf16 %v579_v24, %v579_v24 }
 0x234   : > { %v1044_v26 = vpop.eup %1043 }
 0x235   : > { %v580_v27 = vmul.f32 %v1044_v26, %v1036_v3  ;;  %993 = vmatmul.mubr.msk.bf16.vlgmr.msra.gmra.mrb[12].mxu0 %vm337_vm1, %v583_v25 }
 0x237   : > { %v584_v28 = vpack.c.bf16 %v580_v27, %v580_v27 }
 0x239   : > { %999 = vmatmul.mubr.msk.bf16.vlgmr.msra.gmra.mrb[12].mxu1 %vm337_vm1, %v584_v28 }
 0x300   : > { %v626_v29 = vpop.f32.mrb[8].mxu0 }
 0x301   : > { %v770_v30 = vpack.c.bf16 %v626_v29, %v626_v29  ;;  %v982_v31 = vpop.f32.mrb[9].mxu0 }
 0x302   : > { %v629_v32 = vpop.f32.mrb[10].mxu0 }
 0x303   : > { %775 = vst.msk [vmem:[%s321_s8] sm:$0xf] %vm774_vm5, %v770_v30  ;;  %v983_v0 = vpop.f32.mrb[11].mxu0 }
 0x304   : > { %v672_v33 = vpop.f32.mrb[8].mxu1 }
 0x305   : > { %v771_v34 = vpack.c.bf16 %v672_v33, %v672_v33  ;;  %v988_v35 = vpop.f32.mrb[9].mxu1 }
 0x306   : > { %v675_v36 = vpop.f32.mrb[10].mxu1 }
 0x307   : > { %776 = vst.msk [vmem:[%s321_s8 + $0x4] sm:$0xf] %vm774_vm5, %v771_v34  ;;  %v989_v37 = vpop.f32.mrb[11].mxu1 }
 0x308   : > { %v718_v38 = vpop.f32.mrb[12].mxu0 }
 0x309   : > { %v772_v39 = vpack.c.bf16 %v718_v38, %v718_v38  ;;  %v994_v40 = vpop.f32.mrb[13].mxu0 }
 0x30a   : > { %v721_v41 = vpop.f32.mrb[14].mxu0 }
 0x30b   : > { %777 = vst.msk [vmem:[%s321_s8 + $0x8] sm:$0xf] %vm774_vm5, %v772_v39  ;;  %v995_v42 = vpop.f32.mrb[15].mxu0 }
 0x30c   : > { %v764_v43 = vpop.f32.mrb[12].mxu1 }
 0x30d   : > { %v773_v44 = vpack.c.bf16 %v764_v43, %v764_v43  ;;  %v1000_v45 = vpop.f32.mrb[13].mxu1 }
 0x30e   : > { %v767_v46 = vpop.f32.mrb[14].mxu1 }
 0x30f   : > { %778 = vst.msk [vmem:[%s321_s8 + $0xc] sm:$0xf] %vm774_vm5, %v773_v44  ;;  %v1001_v47 = vpop.f32.mrb[15].mxu1 }
 0x310 PF: > { %s14_s17 = sadd.s32 1, %s1067_s17   ;;  %s1206_s15 = smov %s1063_s16 }
 0x311   : > { %p11_p5 = scmp.ge.s32.totalorder %s14_s17, 4   ;;  %s1207_s16 = smov %s1209_s18 }
 0x313   :  { %13 = sbr.rel (!%p11_p5) target bundleno = 2 (0x2), region = 75 }

// kernel: encoder_decoder_forward.59
= control target key start
LH: loop header
LB: loop body
LE: loop exit
PB: predicated region body
PF: predicated region fallthrough
CT: control target
= control target key end

     0   :  { %8 = vsyncpa [#allocation3], 0  ;;  %s529_s0 = inlined_call_operand.vmem [shape: f32[16,32], index: 0, kind: input, shape index: {}]   ;;  %s530_s1 = inlined_call_operand.vmem [shape: f32[1,32], index: 1, kind: input, shape index: {}]   ;;  %s531_s2 = inlined_call_operand.vmem [shape: f32[1,32], index: 2, kind: input, shape index: {}]   ;;  %s532_s3 = inlined_call_operand.hbm [shape: f32[16,32], index: 3, kind: output, shape index: {}]  }
   0x1   :  { %10 = vsyncpa [#allocation3 + $0x1], 0  ;;  %s420_s12 = smov 0   ;;  %s422_s13 = smov 0  }
   0x2   :  { %s424_s14 = smov 0   ;;  %s426_s15 = smov 0  }
   0x3 LB: > { %s441_s16 = sadd.s32 4294967295, %s397_s15   ;;  %s280_s17 = sadd.s32 4294967294, %s397_s15   ;;  %s397_s15 = sphi %s426_s15, %s538_s15   ;;  %s393_s14 = sphi %s424_s14, %s537_s14   ;;  %s389_s13 = sphi %s422_s13, %s536_s13   ;;  %s385_s12 = sphi %s420_s12, %s535_s12  }
   0x4   : > { %s445_s18 = sadd.s32 1, %s397_s15   ;;  %s91_s19 = sadd.s32 1, %s393_s14 }
   0x5   : > { %s88_s20 = ssub.s32 %s397_s15, %s445_s18  ;;  %p101_p0 = scmp.ne.s32.totalorder %s393_s14, %s389_s13 }
   0x6   : > { %p89_p1 = scmp.eq.s32.totalorder %s88_s20, 0  ;;  %p102_p2 = scmp.eq.s32.totalorder %s441_s16, 1 }
   0x7   : > { %p107_p3 = scmp.ne.s32.totalorder %s389_s13, %s385_s12  ;;  %p108_p4 = scmp.eq.s32.totalorder %s280_s17, 1 }
   0x8   : > { %s456_s21 = scalar_select %p89_p1, %s393_s14, %s91_s19  }
   0x9   : > { %p458_p5 = por %p102_p2, %p101_p0  ;;  %p462_p6 = por %p108_p4, %p107_p3 }
   0xa   : > { %p283_p7 = scmp.ge.s32.totalorder %s397_s15, 1  ;;  %p139_p8 = scmp.lt.s32.totalorder %s397_s15, 3 }
   0xc   : > { %p140_p9 = pnand %p283_p7, %p139_p8 }
   0xd   : > { %p162_p10 = scmp.lt.s32.totalorder (!%p140_p9), %s441_s16, 1  ;;  %vm167_vm0 = vcmask (!%p140_p9), 261120   ;;  %s159_s29 = sand.u32 (!%p140_p9), 1, %s389_s13   ;;  %v286_v15 = vld [vmem:[%s530_s1] ss:$0 sm:$0xff] (!%p140_p9) }
   0xe   : > { %143 = sbr.rel (%p140_p9) target bundleno = 366 (0x16e), region = 32  ;;  %s284_s30 = sshll.u32 (!%p140_p9), %s159_s29, 3  ;;  %v287_v18 = vld [vmem:[%s531_s2] ss:$0 sm:$0xff] (!%p140_p9) }
   0xf   : > { %s289_s8 = sshll.u32 (!%p140_p9), %s441_s16, 7  ;;  %s161_s9 = scalar_lea.vmem (!%p140_p9), [#allocation2], %s284_s30 }
  0x10   : > { %s221_s10 = sshll.u32 (!%p140_p9), %s161_s9, 4  ;;  %s486_s19 = scalar_lea.hbm (!%p140_p9), %s532_s3, %s289_s8  ;;  %s488_s10 = int_to_ptr.vmem [resolvable:$true] %s221_s10 }
  0x11   : > { %s208_s20 = scalar_lea.sflag (!%p140_p9), [#allocation3], %s159_s29 }
  0x15   : > { %s163_s24 = scalar_select %p162_p10, %s441_s16, 1 }
  0x16   : > { %s399_s16 = smov [#allocation2]  }
  0x17   : > { %s285_s25 = sshll.u32 %s163_s24, 3  ;;  %s335_s24 = scalar_lea.vmem %s488_s10, 128 }
  0x18   : > { %s165_s28 = scalar_lea.vmem %s529_s0, %s285_s25  ;;  %p336_p11 = scmp.ne.s32.totalorder %s488_s10, %s335_s24 }
  0x19   : > { %v166_v0 = vld [vmem:[%s165_s28] sm:$0xff]  ;;  %s339_s25 = sshll.u32 %s399_s16, 4  ;;  %s340_s25 = int_to_ptr.vmem [resolvable:$false] %s339_s25 }
  0x1a   : > { %v168_v1 = vsel %vm167_vm0, %v166_v0, 0.0  ;;  %p337_p12 = pnand %p336_p11, %p458_p5  ;;  %s341_s26 = scalar_lea.vmem %s340_s25, 256 }
  0x1b   : > { %169 = vadd.xlane.f32.xlu0 %v168_v1  ;;  %p342_p0 = scmp.lt.s32.totalorder %s488_s10, %s340_s25  ;;  %p343_p1 = scmp.lt.s32.totalorder %s341_s26, %s335_s24 }
  0x1c   : > { %p338_p13 = pneg %p337_p12 }
  0x1d   : > { %p344_p2 = por %p343_p1, %p342_p0 }
  0x1f   : > { %p345_p3 = pnand %p344_p2, %p338_p13 }
  0xa8   : > { %v170_v2 = vpop.xlane.xlu0 %169 }
  0xa9   : > { %v172_v3 = vmul.f32 0.03125, %v170_v2 }
  0xab   : > { %v173_v4 = vsub.f32 %v166_v0, %v172_v3 }
  0xad   : > { %v174_v5 = vmul.f32 %v173_v4, %v173_v4  ;;  %v196_v16 = vmul.f32 %v286_v15, %v173_v4 }
  0xaf   : > { %v175_v6 = vsel %vm167_vm0, %v174_v5, 0.0 }
  0xb0   : > { %176 = vadd.xlane.f32.xlu0 %v175_v6 }
 0x13d   : > { %v177_v7 = vpop.xlane.xlu0 %176 }
 0x13e   : > { %v179_v8 = vmul.f32 0.032258064, %v177_v7 }
 0x140   : > { %331 = vrsqrt.f32 %v179_v8  ;;  %vm182_vm1 = vcmp.eq.f32.partialorder %v179_v8, inf  ;;  %v185_v11 = vand.u32 2147483648, %v179_v8  ;;  %vm184_vm2 = vcmp.eq.f32.partialorder %v179_v8, 0.0 }
 0x14a   : > { %v332_v9 = vpop.eup %331 }
 0x14b   : > { %v181_v10 = vmul.f32 %v332_v9, %v179_v8 }
 0x14d   : > { %v183_v12 = vsel %vm182_vm1, %v179_v8, %v181_v10 }
 0x14e   : > { %v186_v13 = vsel %vm184_vm2, %v185_v11, %v183_v12 }
 0x14f   : > { %v187_v14 = vadd.f32 1e-06, %v186_v13 }
 0x151   : > { %333 = vrcp.f32 %v187_v14 }
 0x15b   : > { %v334_v17 = vpop.eup %333 }
 0x15c   : > { %v197_v19 = vmul.f32 %v334_v17, %v196_v16 }
 0x15e   : > { %v205_v20 = vadd.f32 %v287_v18, %v197_v19 }
 0x160   : > { %206 = vst.msk [vmem:[%s161_s9] sm:$0xff] %vm167_vm0, %v205_v20 }
 0x161   : > { %348 = shalt.err (!%p345_p3)
}
 0x162   : > { %s349_s27 = scalar_lea.hbm %s486_s19, 128  ;;  %s353_s30 = scalar_lea.hbm %s532_s3, 256 }
 0x163   : > { %p350_p4 = scmp.ne.s32.totalorder %s486_s19, %s349_s27  ;;  %p354_p9 = scmp.lt.u32.totalorder %s486_s19, %s532_s3 }
 0x164   : > { %p355_p10 = scmp.lt.u32.totalorder %s353_s30, %s349_s27  ;;  %p357_p12 = scmp.lt.u32.totalorder %s349_s27, %s486_s19 }
 0x165   : > { %p351_p7 = pnand %p350_p4, %p458_p5 }
 0x166   : > { %p356_p11 = por %p355_p10, %p354_p9 }
 0x167   : > { %p352_p8 = pneg %p351_p7 }
 0x168   : > { %p358_p13 = por %p357_p12, %p356_p11 }
 0x16a   : > { %p359_p0 = pnand %p358_p13, %p352_p8 }
 0x16c   : > { %362 = shalt.err (!%p359_p0)
}
 0x16d   : > { %292 = dma.vmem_to_hbm [thread:$0]  (%p458_p5), %s488_s10, 128, %s486_s19, %s208_s20  }
 0x16e PF: > { %p298_p1 = scmp.ge.s32.totalorder %s397_s15, 2  ;;  %s233_s6 = sand.u32 1, %s385_s12  }
 0x16f   : > { %s234_s7 = scalar_lea.sflag [#allocation3], %s233_s6 }
 0x170   : > { %p295_p2 = pnand %p298_p1, %p462_p6 }
 0x172   : > { %380 = dma.done.wait (!%p295_p2), %s234_s7, 128  }
 0x173   : > { %382 = vsyncadd (!%p295_p2), %s234_s7, 4294967168  ;;  %p13_p3 = scmp.ge.s32.totalorder %s445_s18, 4   ;;  %s535_s12 = smov %s389_s13 }
 0x174   : > { %s536_s13 = smov %s393_s14  ;;  %s537_s14 = smov %s456_s21 }
 0x175   : > { %s538_s15 = smov %s445_s18  ;;  %15 = sbr.rel (!%p13_p3) target bundleno = 3 (0x3), region = 67 }
 0x17c   :  { %239 = vsyncpa [#allocation3], 1 }
 0x17d   :  { %241 = vsyncpa [#allocation3 + $0x1], 1 }

// kernel: encoder_decoder_forward.40
= control target key start
LH: loop header
LB: loop body
LE: loop exit
PB: predicated region body
PF: predicated region fallthrough
CT: control target
= control target key end

     0   :  { %s311_s12 = smov 0   ;;  %s344_s0 = inlined_call_operand.vmem [shape: f32[16,32], index: 0, kind: input, shape index: {}]   ;;  %s345_s1 = inlined_call_operand.vmem [shape: f32[1,32], index: 1, kind: input, shape index: {}]   ;;  %s346_s2 = inlined_call_operand.vmem [shape: f32[1,32], index: 2, kind: input, shape index: {}]   ;;  %s347_s3 = inlined_call_operand.vmem [shape: f32[16,32], index: 3, kind: output, shape index: {}]  }
   0x1 LB: > { %s260_s13 = sadd.s32 4294967295, %s289_s12   ;;  %p264_p0 = scmp.ge.s32.totalorder %s289_s12, 1  ;;  %s289_s12 = sphi %s311_s12, %s13_s12  }
   0x2   : > { %p136_p1 = scmp.lt.s32.totalorder %s289_s12, 3 }
   0x4   : > { %p137_p2 = pnand %p264_p0, %p136_p1 }
   0x5   : > { %p158_p3 = scmp.lt.s32.totalorder (!%p137_p2), %s260_s13, 1  ;;  %vm167_vm0 = vcmask (!%p137_p2), 261120   ;;  %v267_v15 = vld [vmem:[%s345_s1] ss:$0 sm:$0xff] (!%p137_p2) }
   0x6   : > { %140 = sbr.rel (%p137_p2) target bundleno = 344 (0x158), region = 32  ;;  %v268_v18 = vld [vmem:[%s346_s2] ss:$0 sm:$0xff] (!%p137_p2) }
   0xd   : > { %s349_s13 = smov (!%p158_p3, %s260_s13), 1 }
   0xe   : > { %s265_s14 = sshll.u32 %s349_s13, 3 }
   0xf   : > { %s161_s17 = scalar_lea.vmem %s344_s0, %s265_s14  ;;  %s165_s24 = scalar_lea.vmem %s347_s3, %s265_s14 }
  0x10   : > { %v166_v0 = vld [vmem:[%s161_s17] sm:$0xff] }
  0x11   : > { %v168_v1 = vsel %vm167_vm0, %v166_v0, 0.0 }
  0x12   : > { %169 = vadd.xlane.f32.xlu0 %v168_v1 }
  0x9f   : > { %v170_v2 = vpop.xlane.xlu0 %169 }
  0xa0   : > { %v172_v3 = vmul.f32 0.03125, %v170_v2 }
  0xa2   : > { %v173_v4 = vsub.f32 %v166_v0, %v172_v3 }
  0xa4   : > { %v174_v5 = vmul.f32 %v173_v4, %v173_v4  ;;  %v196_v16 = vmul.f32 %v267_v15, %v173_v4 }
  0xa6   : > { %v175_v6 = vsel %vm167_vm0, %v174_v5, 0.0 }
  0xa7   : > { %176 = vadd.xlane.f32.xlu0 %v175_v6 }
 0x134   : > { %v177_v7 = vpop.xlane.xlu0 %176 }
 0x135   : > { %v179_v8 = vmul.f32 0.032258064, %v177_v7 }
 0x137   : > { %279 = vrsqrt.f32 %v179_v8  ;;  %vm182_vm1 = vcmp.eq.f32.partialorder %v179_v8, inf  ;;  %v185_v11 = vand.u32 2147483648, %v179_v8  ;;  %vm184_vm2 = vcmp.eq.f32.partialorder %v179_v8, 0.0 }
 0x141   : > { %v280_v9 = vpop.eup %279 }
 0x142   : > { %v181_v10 = vmul.f32 %v280_v9, %v179_v8 }
 0x144   : > { %v183_v12 = vsel %vm182_vm1, %v179_v8, %v181_v10 }
 0x145   : > { %v186_v13 = vsel %vm184_vm2, %v185_v11, %v183_v12 }
 0x146   : > { %v187_v14 = vadd.f32 1e-06, %v186_v13 }
 0x148   : > { %281 = vrcp.f32 %v187_v14 }
 0x152   : > { %v282_v17 = vpop.eup %281 }
 0x153   : > { %v197_v19 = vmul.f32 %v282_v17, %v196_v16 }
 0x155   : > { %v205_v20 = vadd.f32 %v268_v18, %v197_v19 }
 0x157   : > { %206 = vst.msk [vmem:[%s165_s24] sm:$0xff] %vm167_vm0, %v205_v20 }
 0x158 PF: > { %s13_s12 = sadd.s32 1, %s289_s12  }
 0x159   : > { %p10_p4 = scmp.ge.s32.totalorder %s13_s12, 4  }
 0x15b   :  { %12 = sbr.rel (!%p10_p4) target bundleno = 1 (0x1), region = 62 }

</bundles_post_ra>
